<compile_context>
chip_gen: v6e
topology: v6e:2x2x1
jax: 0.10.0
libtpu: 0.0.40
codegen_flags: <defaults>
</compile_context>

<pallas_src>
import functools

import jax
import jax.numpy as jnp
from jax.experimental import pallas as pl
from jax.experimental.pallas import tpu as pltpu


def _feature_agg_kernel(idx_ref, x_ref, adj_ref, out_ref, *, K, D, transpose_out):
    # Block shapes:
    #   idx (Bt, N, K) i32      x (Bt, N, D+1) f32 (last col zero)
    #   adj (Bt, N, K*K) f32    out (Bt, N, D) f32  or (Bt, D, N) f32
    Bt, N, _ = idx_ref.shape

    idx = idx_ref[...]                                             # (Bt, N, K)
    x_aug = x_ref[...]                                             # (Bt, N, D+1)
    adj_f = adj_ref[...]                                           # (Bt, N, K*K)

    col = jax.lax.broadcasted_iota(jnp.int32, (Bt, N, N), 2)       # lane index

    # Phase 1: per-j one-hot gather.  G_j is reused below for the scatter.
    #   S_j[b, n, :] = x_aug[b, idx[b, n, j], :]
    gs = []
    ss = []
    for j in range(K):                                             # K small & static
        g = (idx[:, :, j:j + 1] == col).astype(jnp.float32)        # (Bt, N, N)
        s = jax.lax.dot_general(
            g, x_aug,
            dimension_numbers=(((2,), (1,)), ((0,), (0,))),
            preferred_element_type=jnp.float32)                    # (Bt, N, D+1)
        gs.append(g)
        ss.append(s)

    # Constant-1 column at lane D (the cnt column); x_aug's lane D is zero so
    # the adj multiply-adds below leave it untouched.
    ones_col = (jax.lax.broadcasted_iota(jnp.int32, (Bt, N, D + 1), 2) == D
                ).astype(jnp.float32)                              # (Bt, N, D+1)

    # Phase 2: per-k local transform + scatter-add as a transposed one-hot
    # matmul; the count rides along as the extra (D-th) output column.
    acc = None
    for k in range(K):
        node_aug = ones_col
        for j in range(K):
            a_kj = adj_f[:, :, k * K + j: k * K + j + 1]           # (Bt, N, 1)
            node_aug = node_aug + a_kj * ss[j]                     # (Bt, N, D+1)
        if transpose_out:
            # term[b, d, i] = sum_n node_aug[b, n, d] * G_k[b, n, i]
            term = jax.lax.dot_general(
                node_aug, gs[k],
                dimension_numbers=(((1,), (1,)), ((0,), (0,))),
                preferred_element_type=jnp.float32)                # (Bt, D+1, N)
        else:
            # term[b, i, d] = sum_n G_k[b, n, i] * node_aug[b, n, d]
            term = jax.lax.dot_general(
                gs[k], node_aug,
                dimension_numbers=(((1,), (1,)), ((0,), (0,))),
                preferred_element_type=jnp.float32)                # (Bt, N, D+1)
        acc = term if acc is None else acc + term

    if transpose_out:
        cnt = acc[:, D:D + 1, :]                                   # (Bt, 1, N)
        inv = pl.reciprocal(cnt + 1e-14, approx=False)
        out_ref[...] = (acc[:, :D, :] * inv).astype(out_ref.dtype)
    else:
        cnt = acc[:, :, D:D + 1]                                   # (Bt, N, 1)
        inv = pl.reciprocal(cnt + 1e-14, approx=False)
        out_ref[...] = (acc[:, :, :D] * inv).astype(out_ref.dtype)


def _round_up(v, m):
    return -(-v // m) * m


def _vmem_capacity_bytes():
    """Physical VMEM of this chip; conservative fallback when unqueryable."""
    try:
        cap = int(getattr(pltpu.get_tpu_info(), "vmem_capacity_bytes", 0))
        if cap > 0:
            return cap
    except Exception:
        pass
    return 64 << 20   # v7x worst case (v5e/v6e have 128 MiB)


def _per_batch_vmem_bytes(N, D, K, transpose_out):
    """Per-batch VMEM footprint with (8,128) padding and double-buffered blocks."""
    sN, lN = _round_up(N, 8), _round_up(N, 128)
    lD1 = _round_up(D + 1, 128)
    lK = _round_up(K, 128)
    lKK = _round_up(K * K, 128)
    b = 0
    # pipelined in/out blocks (x2 double buffering)
    b += 2 * sN * lK * 4                      # indices (i32)
    b += 2 * sN * lD1 * 4                     # x (padded with cnt column)
    b += 2 * sN * lKK * 4                     # adj (flattened K*K)
    if transpose_out:
        b += 2 * _round_up(D, 8) * lN * 4     # out (Bt, D, N)
    else:
        b += 2 * sN * _round_up(D, 128) * 4   # out (Bt, N, D)
    # in-kernel intermediates (worst-case simultaneously live)
    b += (K + 1) * sN * lN * 4                # K one-hots + iota
    b += (K + 3) * sN * lD1 * 4               # K gathered S_j + ones template + node_aug (x2)
    if transpose_out:
        b += _round_up(D + 1, 8) * lN * 4     # accumulator
    else:
        b += sN * lD1 * 4
    return b


def _choose_batch_tile(B, N, D, K, transpose_out):
    """Pick (Bt, n_steps): VMEM-safe, >=2 grid steps when B>=2, no divisor req."""
    budget = int(_vmem_capacity_bytes() * 0.45)
    per_batch = max(1, _per_batch_vmem_bytes(N, D, K, transpose_out))
    cap = max(1, budget // per_batch)
    if B >= 2:
        cap = min(cap, -(-B // 2))            # keep >= 2 steps for 2-TC chips
    bt = max(1, min(cap, B))
    n_steps = -(-B // bt)
    return bt, n_steps


class FeatureAggregation:
    """JAX/Pallas equivalent of the PyTorch feature_aggregation module."""

    def __init__(self, K, N):
        self.K = K
        self.N = N

    def __call__(self, x, adj, batch_indices, indices):
        # batch_indices only broadcasts the batch axis in torch; it is implicit
        # in the per-batch-block grid here.
        del batch_indices
        B, N, D = x.shape
        K = indices.shape[-1]
        assert N == self.N and K == self.K

        # Lane-dense output layout: store (Bt, D, N) when N is the wider minor dim.
        transpose_out = N >= D

        # Wrapper-side layout plumbing (cheap XLA ops on small arrays):
        #  - x gains one zero feature column -> scatter matmul emits cnt there.
        #  - adj flattened to (B, N, K*K) so adj[b,n,k,j] is lane k*K+j.
        #  - indices passed once as (B, N, K) i32 (no K-replication).
        x_aug = jnp.concatenate(
            [x.astype(jnp.float32), jnp.zeros((B, N, 1), jnp.float32)], axis=-1)
        adj_f = adj.astype(jnp.float32).reshape(B, N, K * K)
        idx = indices.astype(jnp.int32)

        Bt, n_steps = _choose_batch_tile(B, N, D, K, transpose_out)
        B_pad = Bt * n_steps
        if B_pad != B:
            pad = B_pad - B
            x_aug = jnp.pad(x_aug, ((0, pad), (0, 0), (0, 0)))
            adj_f = jnp.pad(adj_f, ((0, pad), (0, 0), (0, 0)))
            idx = jnp.pad(idx, ((0, pad), (0, 0), (0, 0)))   # index 0 is valid; output sliced off

        out_shape = (B_pad, D, N) if transpose_out else (B_pad, N, D)
        out_block = (Bt, D, N) if transpose_out else (Bt, N, D)

        kernel = functools.partial(
            _feature_agg_kernel, K=K, D=D, transpose_out=transpose_out)

        flops = 4 * B_pad * K * N * N * (D + 1)
        bytes_accessed = 4 * B_pad * (N * K + N * (D + 1) + N * K * K + N * D)
        vmem_limit = int(min(_vmem_capacity_bytes() * 0.75, 110 << 20))

        res = pl.pallas_call(
            kernel,
            out_shape=jax.ShapeDtypeStruct(out_shape, x.dtype),
            grid=(n_steps,),
            in_specs=[
                pl.BlockSpec((Bt, N, K), lambda b: (b, 0, 0)),        # indices
                pl.BlockSpec((Bt, N, D + 1), lambda b: (b, 0, 0)),    # x (+cnt col)
                pl.BlockSpec((Bt, N, K * K), lambda b: (b, 0, 0)),    # adj
            ],
            out_specs=pl.BlockSpec(out_block, lambda b: (b, 0, 0)),
            compiler_params=pltpu.CompilerParams(
                dimension_semantics=("parallel",),
                vmem_limit_bytes=vmem_limit),
            cost_estimate=pl.CostEstimate(
                flops=flops, transcendentals=0,
                bytes_accessed=bytes_accessed),
        )(idx, x_aug, adj_f)

        if transpose_out:
            res = jnp.transpose(res, (0, 2, 1))
        if B_pad != B:
            res = res[:B]
        return res


def _reference(x, adj, indices):
    # Pure-JAX reference (mirrors the PyTorch gather / matmul / scatter_add / put_).
    B, N, D = x.shape
    K = indices.shape[-1]

    def one(xb, adjb, idxb):
        sel = xb[idxb]                                                  # (N, K, D)
        node_new = jnp.einsum('nkj,njd->nkd', adjb, sel).reshape(N * K, D)
        flat = idxb.reshape(-1)
        d1 = jnp.zeros((N, D), jnp.float32).at[flat].add(node_new)
        cnt = jnp.full((N,), 1e-14, jnp.float32).at[flat].add(1.0)
        return d1 / cnt[:, None]

    return jax.vmap(one)(x, adj, indices)


if __name__ == "__main__":
    def run_case(B, N, D, K):
        key = jax.random.PRNGKey(0)
        k1, k2, k3 = jax.random.split(key, 3)
        x = jax.random.normal(k1, (B, N, D), dtype=jnp.float32)
        adj = jax.random.normal(k2, (B, N, K, K), dtype=jnp.float32)
        indices = jax.random.randint(k3, (B, N, K), 0, N, dtype=jnp.int32)
        batch_indices = jnp.arange(B, dtype=jnp.int32)[:, None, None]

        mod = FeatureAggregation(K, N)
        out = jax.block_until_ready(mod(x, adj, batch_indices, indices))
        ref = _reference(x, adj, indices)
        assert out.shape == (B, N, D)
        assert jnp.allclose(out, ref, atol=1e-4, rtol=1e-4), \
            f"mismatch vs reference for (B={B}, N={N}, D={D}, K={K})"

    # Case 1: D > N  -> standard (B, N, D) output layout, even batch split.
    run_case(B=8, N=16, D=32, K=4)
    # Case 2: N > D  -> lane-dense transposed store + non-divisor (padded) batch tile.
    run_case(B=3, N=32, D=16, K=4)

    print("KERNEL_OK")
</pallas_src>

<mosaic_0001>
module attributes {stable_mosaic.version = 11 : i64} {
  func.func @_feature_agg_kernel(%arg0: i32, %arg1: memref<4x16x4xi32, #tpu.memory_space<vmem>>, %arg2: memref<4x16x33xf32, #tpu.memory_space<vmem>>, %arg3: memref<4x16x16xf32, #tpu.memory_space<vmem>>, %arg4: memref<4x16x32xf32, #tpu.memory_space<vmem>>) attributes {dimension_semantics = [#tpu.dimension_semantics<parallel>], iteration_bounds = array<i64: 2>, scalar_prefetch = 0 : i64, scratch_operands = 0 : i64, tpu.core_type = #tpu.core_type<tc>, window_params = [{transform_indices = @transform_0, window_bounds = array<i64: 4, 16, 4>}, {transform_indices = @transform_1, window_bounds = array<i64: 4, 16, 33>}, {transform_indices = @transform_2, window_bounds = array<i64: 4, 16, 16>}, {transform_indices = @transform_3, window_bounds = array<i64: 4, 16, 32>}]} {
    %c0 = arith.constant 0 : index
    %c0_0 = arith.constant 0 : index
    %c0_1 = arith.constant 0 : index
    %0 = vector.load %arg1[%c0, %c0_0, %c0_1] : memref<4x16x4xi32, #tpu.memory_space<vmem>>, vector<4x16x4xi32>
    %c0_2 = arith.constant 0 : index
    %c0_3 = arith.constant 0 : index
    %c0_4 = arith.constant 0 : index
    %1 = vector.load %arg2[%c0_2, %c0_3, %c0_4] : memref<4x16x33xf32, #tpu.memory_space<vmem>>, vector<4x16x33xf32>
    %c0_5 = arith.constant 0 : index
    %c0_6 = arith.constant 0 : index
    %c0_7 = arith.constant 0 : index
    %2 = vector.load %arg3[%c0_5, %c0_6, %c0_7] : memref<4x16x16xf32, #tpu.memory_space<vmem>>, vector<4x16x16xf32>
    %3 = tpu.iota {dimensions = array<i32: 2>} : vector<4x16x16xi32>
    %4 = vector.extract_strided_slice %0 {offsets = [0, 0, 0], sizes = [4, 16, 1], strides = [1, 1, 1]} : vector<4x16x4xi32> to vector<4x16x1xi32>
    %5 = vector.broadcast %4 : vector<4x16x1xi32> to vector<4x16x16xi32>
    %6 = arith.cmpi eq, %5, %3 : vector<4x16x16xi32>
    %7 = arith.extui %6 : vector<4x16x16xi1> to vector<4x16x16xi32>
    %8 = arith.sitofp %7 : vector<4x16x16xi32> to vector<4x16x16xf32>
    %cst = arith.constant dense<0.000000e+00> : vector<4x16x33xf32>
    %9 = tpu.matmul %8, %1, %cst {dimension_numbers = #tpu.dot_dimension_numbers<[2], [1], [1], [2], [0, 0, 0, 1, 1, 2], [0], [0]>} : vector<4x16x16xf32>, vector<4x16x33xf32>, vector<4x16x33xf32> -> vector<4x16x33xf32>
    %10 = vector.extract_strided_slice %0 {offsets = [0, 0, 1], sizes = [4, 16, 1], strides = [1, 1, 1]} : vector<4x16x4xi32> to vector<4x16x1xi32>
    %11 = vector.broadcast %10 : vector<4x16x1xi32> to vector<4x16x16xi32>
    %12 = arith.cmpi eq, %11, %3 : vector<4x16x16xi32>
    %13 = arith.extui %12 : vector<4x16x16xi1> to vector<4x16x16xi32>
    %14 = arith.sitofp %13 : vector<4x16x16xi32> to vector<4x16x16xf32>
    %cst_8 = arith.constant dense<0.000000e+00> : vector<4x16x33xf32>
    %15 = tpu.matmul %14, %1, %cst_8 {dimension_numbers = #tpu.dot_dimension_numbers<[2], [1], [1], [2], [0, 0, 0, 1, 1, 2], [0], [0]>} : vector<4x16x16xf32>, vector<4x16x33xf32>, vector<4x16x33xf32> -> vector<4x16x33xf32>
    %16 = vector.extract_strided_slice %0 {offsets = [0, 0, 2], sizes = [4, 16, 1], strides = [1, 1, 1]} : vector<4x16x4xi32> to vector<4x16x1xi32>
    %17 = vector.broadcast %16 : vector<4x16x1xi32> to vector<4x16x16xi32>
    %18 = arith.cmpi eq, %17, %3 : vector<4x16x16xi32>
    %19 = arith.extui %18 : vector<4x16x16xi1> to vector<4x16x16xi32>
    %20 = arith.sitofp %19 : vector<4x16x16xi32> to vector<4x16x16xf32>
    %cst_9 = arith.constant dense<0.000000e+00> : vector<4x16x33xf32>
    %21 = tpu.matmul %20, %1, %cst_9 {dimension_numbers = #tpu.dot_dimension_numbers<[2], [1], [1], [2], [0, 0, 0, 1, 1, 2], [0], [0]>} : vector<4x16x16xf32>, vector<4x16x33xf32>, vector<4x16x33xf32> -> vector<4x16x33xf32>
    %22 = vector.extract_strided_slice %0 {offsets = [0, 0, 3], sizes = [4, 16, 1], strides = [1, 1, 1]} : vector<4x16x4xi32> to vector<4x16x1xi32>
    %23 = vector.broadcast %22 : vector<4x16x1xi32> to vector<4x16x16xi32>
    %24 = arith.cmpi eq, %23, %3 : vector<4x16x16xi32>
    %25 = arith.extui %24 : vector<4x16x16xi1> to vector<4x16x16xi32>
    %26 = arith.sitofp %25 : vector<4x16x16xi32> to vector<4x16x16xf32>
    %cst_10 = arith.constant dense<0.000000e+00> : vector<4x16x33xf32>
    %27 = tpu.matmul %26, %1, %cst_10 {dimension_numbers = #tpu.dot_dimension_numbers<[2], [1], [1], [2], [0, 0, 0, 1, 1, 2], [0], [0]>} : vector<4x16x16xf32>, vector<4x16x33xf32>, vector<4x16x33xf32> -> vector<4x16x33xf32>
    %28 = tpu.iota {dimensions = array<i32: 2>} : vector<4x16x33xi32>
    %c32_i32 = arith.constant 32 : i32
    %29 = vector.broadcast %c32_i32 : i32 to vector<4x16x33xi32>
    %30 = arith.cmpi eq, %28, %29 : vector<4x16x33xi32>
    %31 = arith.extui %30 : vector<4x16x33xi1> to vector<4x16x33xi32>
    %32 = arith.sitofp %31 : vector<4x16x33xi32> to vector<4x16x33xf32>
    %33 = vector.extract_strided_slice %2 {offsets = [0, 0, 0], sizes = [4, 16, 1], strides = [1, 1, 1]} : vector<4x16x16xf32> to vector<4x16x1xf32>
    %34 = vector.broadcast %33 : vector<4x16x1xf32> to vector<4x16x33xf32>
    %35 = arith.mulf %34, %9 : vector<4x16x33xf32>
    %36 = arith.addf %32, %35 : vector<4x16x33xf32>
    %37 = vector.extract_strided_slice %2 {offsets = [0, 0, 1], sizes = [4, 16, 1], strides = [1, 1, 1]} : vector<4x16x16xf32> to vector<4x16x1xf32>
    %38 = vector.broadcast %37 : vector<4x16x1xf32> to vector<4x16x33xf32>
    %39 = arith.mulf %38, %15 : vector<4x16x33xf32>
    %40 = arith.addf %36, %39 : vector<4x16x33xf32>
    %41 = vector.extract_strided_slice %2 {offsets = [0, 0, 2], sizes = [4, 16, 1], strides = [1, 1, 1]} : vector<4x16x16xf32> to vector<4x16x1xf32>
    %42 = vector.broadcast %41 : vector<4x16x1xf32> to vector<4x16x33xf32>
    %43 = arith.mulf %42, %21 : vector<4x16x33xf32>
    %44 = arith.addf %40, %43 : vector<4x16x33xf32>
    %45 = vector.extract_strided_slice %2 {offsets = [0, 0, 3], sizes = [4, 16, 1], strides = [1, 1, 1]} : vector<4x16x16xf32> to vector<4x16x1xf32>
    %46 = vector.broadcast %45 : vector<4x16x1xf32> to vector<4x16x33xf32>
    %47 = arith.mulf %46, %27 : vector<4x16x33xf32>
    %48 = arith.addf %44, %47 : vector<4x16x33xf32>
    %cst_11 = arith.constant dense<0.000000e+00> : vector<4x16x33xf32>
    %49 = tpu.matmul %8, %48, %cst_11 {dimension_numbers = #tpu.dot_dimension_numbers<[1], [1], [2], [2], [0, 0, 0, 2, 1, 2], [0], [0]>} : vector<4x16x16xf32>, vector<4x16x33xf32>, vector<4x16x33xf32> -> vector<4x16x33xf32>
    %50 = vector.extract_strided_slice %2 {offsets = [0, 0, 4], sizes = [4, 16, 1], strides = [1, 1, 1]} : vector<4x16x16xf32> to vector<4x16x1xf32>
    %51 = vector.broadcast %50 : vector<4x16x1xf32> to vector<4x16x33xf32>
    %52 = arith.mulf %51, %9 : vector<4x16x33xf32>
    %53 = arith.addf %32, %52 : vector<4x16x33xf32>
    %54 = vector.extract_strided_slice %2 {offsets = [0, 0, 5], sizes = [4, 16, 1], strides = [1, 1, 1]} : vector<4x16x16xf32> to vector<4x16x1xf32>
    %55 = vector.broadcast %54 : vector<4x16x1xf32> to vector<4x16x33xf32>
    %56 = arith.mulf %55, %15 : vector<4x16x33xf32>
    %57 = arith.addf %53, %56 : vector<4x16x33xf32>
    %58 = vector.extract_strided_slice %2 {offsets = [0, 0, 6], sizes = [4, 16, 1], strides = [1, 1, 1]} : vector<4x16x16xf32> to vector<4x16x1xf32>
    %59 = vector.broadcast %58 : vector<4x16x1xf32> to vector<4x16x33xf32>
    %60 = arith.mulf %59, %21 : vector<4x16x33xf32>
    %61 = arith.addf %57, %60 : vector<4x16x33xf32>
    %62 = vector.extract_strided_slice %2 {offsets = [0, 0, 7], sizes = [4, 16, 1], strides = [1, 1, 1]} : vector<4x16x16xf32> to vector<4x16x1xf32>
    %63 = vector.broadcast %62 : vector<4x16x1xf32> to vector<4x16x33xf32>
    %64 = arith.mulf %63, %27 : vector<4x16x33xf32>
    %65 = arith.addf %61, %64 : vector<4x16x33xf32>
    %cst_12 = arith.constant dense<0.000000e+00> : vector<4x16x33xf32>
    %66 = tpu.matmul %14, %65, %cst_12 {dimension_numbers = #tpu.dot_dimension_numbers<[1], [1], [2], [2], [0, 0, 0, 2, 1, 2], [0], [0]>} : vector<4x16x16xf32>, vector<4x16x33xf32>, vector<4x16x33xf32> -> vector<4x16x33xf32>
    %67 = arith.addf %49, %66 : vector<4x16x33xf32>
    %68 = vector.extract_strided_slice %2 {offsets = [0, 0, 8], sizes = [4, 16, 1], strides = [1, 1, 1]} : vector<4x16x16xf32> to vector<4x16x1xf32>
    %69 = vector.broadcast %68 : vector<4x16x1xf32> to vector<4x16x33xf32>
    %70 = arith.mulf %69, %9 : vector<4x16x33xf32>
    %71 = arith.addf %32, %70 : vector<4x16x33xf32>
    %72 = vector.extract_strided_slice %2 {offsets = [0, 0, 9], sizes = [4, 16, 1], strides = [1, 1, 1]} : vector<4x16x16xf32> to vector<4x16x1xf32>
    %73 = vector.broadcast %72 : vector<4x16x1xf32> to vector<4x16x33xf32>
    %74 = arith.mulf %73, %15 : vector<4x16x33xf32>
    %75 = arith.addf %71, %74 : vector<4x16x33xf32>
    %76 = vector.extract_strided_slice %2 {offsets = [0, 0, 10], sizes = [4, 16, 1], strides = [1, 1, 1]} : vector<4x16x16xf32> to vector<4x16x1xf32>
    %77 = vector.broadcast %76 : vector<4x16x1xf32> to vector<4x16x33xf32>
    %78 = arith.mulf %77, %21 : vector<4x16x33xf32>
    %79 = arith.addf %75, %78 : vector<4x16x33xf32>
    %80 = vector.extract_strided_slice %2 {offsets = [0, 0, 11], sizes = [4, 16, 1], strides = [1, 1, 1]} : vector<4x16x16xf32> to vector<4x16x1xf32>
    %81 = vector.broadcast %80 : vector<4x16x1xf32> to vector<4x16x33xf32>
    %82 = arith.mulf %81, %27 : vector<4x16x33xf32>
    %83 = arith.addf %79, %82 : vector<4x16x33xf32>
    %cst_13 = arith.constant dense<0.000000e+00> : vector<4x16x33xf32>
    %84 = tpu.matmul %20, %83, %cst_13 {dimension_numbers = #tpu.dot_dimension_numbers<[1], [1], [2], [2], [0, 0, 0, 2, 1, 2], [0], [0]>} : vector<4x16x16xf32>, vector<4x16x33xf32>, vector<4x16x33xf32> -> vector<4x16x33xf32>
    %85 = arith.addf %67, %84 : vector<4x16x33xf32>
    %86 = vector.extract_strided_slice %2 {offsets = [0, 0, 12], sizes = [4, 16, 1], strides = [1, 1, 1]} : vector<4x16x16xf32> to vector<4x16x1xf32>
    %87 = vector.broadcast %86 : vector<4x16x1xf32> to vector<4x16x33xf32>
    %88 = arith.mulf %87, %9 : vector<4x16x33xf32>
    %89 = arith.addf %32, %88 : vector<4x16x33xf32>
    %90 = vector.extract_strided_slice %2 {offsets = [0, 0, 13], sizes = [4, 16, 1], strides = [1, 1, 1]} : vector<4x16x16xf32> to vector<4x16x1xf32>
    %91 = vector.broadcast %90 : vector<4x16x1xf32> to vector<4x16x33xf32>
    %92 = arith.mulf %91, %15 : vector<4x16x33xf32>
    %93 = arith.addf %89, %92 : vector<4x16x33xf32>
    %94 = vector.extract_strided_slice %2 {offsets = [0, 0, 14], sizes = [4, 16, 1], strides = [1, 1, 1]} : vector<4x16x16xf32> to vector<4x16x1xf32>
    %95 = vector.broadcast %94 : vector<4x16x1xf32> to vector<4x16x33xf32>
    %96 = arith.mulf %95, %21 : vector<4x16x33xf32>
    %97 = arith.addf %93, %96 : vector<4x16x33xf32>
    %98 = vector.extract_strided_slice %2 {offsets = [0, 0, 15], sizes = [4, 16, 1], strides = [1, 1, 1]} : vector<4x16x16xf32> to vector<4x16x1xf32>
    %99 = vector.broadcast %98 : vector<4x16x1xf32> to vector<4x16x33xf32>
    %100 = arith.mulf %99, %27 : vector<4x16x33xf32>
    %101 = arith.addf %97, %100 : vector<4x16x33xf32>
    %cst_14 = arith.constant dense<0.000000e+00> : vector<4x16x33xf32>
    %102 = tpu.matmul %26, %101, %cst_14 {dimension_numbers = #tpu.dot_dimension_numbers<[1], [1], [2], [2], [0, 0, 0, 2, 1, 2], [0], [0]>} : vector<4x16x16xf32>, vector<4x16x33xf32>, vector<4x16x33xf32> -> vector<4x16x33xf32>
    %103 = arith.addf %85, %102 : vector<4x16x33xf32>
    %104 = vector.extract_strided_slice %103 {offsets = [0, 0, 32], sizes = [4, 16, 1], strides = [1, 1, 1]} : vector<4x16x33xf32> to vector<4x16x1xf32>
    %cst_15 = arith.constant 9.99999982E-15 : f32
    %105 = vector.broadcast %cst_15 : f32 to vector<4x16x1xf32>
    %106 = arith.addf %104, %105 : vector<4x16x1xf32>
    %107 = tpu.reciprocal %106 : vector<4x16x1xf32> -> vector<4x16x1xf32>
    %108 = vector.extract_strided_slice %103 {offsets = [0, 0, 0], sizes = [4, 16, 32], strides = [1, 1, 1]} : vector<4x16x33xf32> to vector<4x16x32xf32>
    %109 = vector.broadcast %107 : vector<4x16x1xf32> to vector<4x16x32xf32>
    %110 = arith.mulf %108, %109 : vector<4x16x32xf32>
    %c0_16 = arith.constant 0 : index
    %c0_17 = arith.constant 0 : index
    %c0_18 = arith.constant 0 : index
    %111 = vector.load %arg4[%c0_16, %c0_17, %c0_18] : memref<4x16x32xf32, #tpu.memory_space<vmem>>, vector<4x16x32xf32>
    tpu.vector_store %arg4[%c0_16, %c0_17, %c0_18], %110 {strides = array<i32>} : memref<4x16x32xf32, #tpu.memory_space<vmem>>, vector<4x16x32xf32>,
    return
  }
  func.func @transform_0(%arg0: i32) -> (i32, i32, i32) {
    %c0_i32 = arith.constant 0 : i32
    %c0_i32_0 = arith.constant 0 : i32
    %c0_i32_1 = arith.constant 0 : i32
    return %arg0, %c0_i32, %c0_i32_0 : i32, i32, i32
  }
  func.func @transform_1(%arg0: i32) -> (i32, i32, i32) {
    %c0_i32 = arith.constant 0 : i32
    %c0_i32_0 = arith.constant 0 : i32
    %c0_i32_1 = arith.constant 0 : i32
    return %arg0, %c0_i32, %c0_i32_0 : i32, i32, i32
  }
  func.func @transform_2(%arg0: i32) -> (i32, i32, i32) {
    %c0_i32 = arith.constant 0 : i32
    %c0_i32_0 = arith.constant 0 : i32
    %c0_i32_1 = arith.constant 0 : i32
    return %arg0, %c0_i32, %c0_i32_0 : i32, i32, i32
  }
  func.func @transform_3(%arg0: i32) -> (i32, i32, i32) {
    %c0_i32 = arith.constant 0 : i32
    %c0_i32_0 = arith.constant 0 : i32
    %c0_i32_1 = arith.constant 0 : i32
    return %arg0, %c0_i32, %c0_i32_0 : i32, i32, i32
  }
}

</mosaic_0001>

<bundles_post_ra>
// kernel: tpu_custom_call.1
= control target key start
LH: loop header
LB: loop body
LE: loop exit
PB: predicated region body
PF: predicated region fallthrough
CT: control target
= control target key end

     0   :  { %8 = vsyncpa [#allocation3], 0  ;;  %s6884_s0 = inlined_call_operand.vmem [shape: s32[8,16,4], index: 0, kind: input, shape index: {}]   ;;  %s6885_s1 = inlined_call_operand.vmem [shape: f32[8,16,33], index: 1, kind: input, shape index: {}]   ;;  %s6886_s2 = inlined_call_operand.hbm [shape: f32[8,16,16], index: 2, kind: input, shape index: {}]   ;;  %s6887_s3 = inlined_call_operand.hbm [shape: f32[8,16,32], index: 3, kind: output, shape index: {}]  }
   0x1   :  { %10 = vsyncpa [#allocation3 + $0x1], 0 }
   0x2   :  { %11 = vsyncpa [#allocation4], 0 }
   0x3   :  { %13 = vsyncpa [#allocation4 + $0x1], 0  ;;  %s5423_s12 = smov 0   ;;  %s5425_s13 = smov 0  }
   0x4   :  { %s5427_s14 = smov 0   ;;  %s5429_s15 = smov 0  }
   0x5 LB: > { %s5444_s16 = sadd.s32 4294967295, %s5377_s15   ;;  %s4545_s17 = sadd.s32 4294967294, %s5377_s15   ;;  %s5377_s15 = sphi %s5429_s15, %s7155_s15   ;;  %s5373_s14 = sphi %s5427_s14, %s7154_s14   ;;  %s5369_s13 = sphi %s5425_s13, %s7153_s13   ;;  %s5365_s12 = sphi %s5423_s12, %s7152_s12  }
   0x6   : > { %s5448_s18 = sadd.s32 1, %s5377_s15   ;;  %s78_s19 = sadd.s32 1, %s5373_s14 }
   0x7   : > { %s75_s20 = ssub.s32 %s5377_s15, %s5448_s18  ;;  %p85_p0 = scmp.ne.s32.totalorder %s5373_s14, %s5369_s13 }
   0x8   : > { %p76_p1 = scmp.eq.s32.totalorder %s75_s20, 0  ;;  %p86_p2 = scmp.eq.s32.totalorder %s5377_s15, 0 }
   0x9   : > { %p91_p3 = scmp.ne.s32.totalorder %s5369_s13, %s5365_s12  ;;  %p92_p4 = scmp.eq.s32.totalorder %s5444_s16, 0 }
   0xa   : > { %s5460_s21 = scalar_select %p76_p1, %s5373_s14, %s78_s19  }
   0xb   : > { %p5462_p5 = por %p86_p2, %p85_p0  ;;  %p5466_p6 = por %p92_p4, %p91_p3 }
   0xc   : > { %p115_p7 = scmp.eq.s32.totalorder %s5444_s16, 1  ;;  %p121_p8 = scmp.eq.s32.totalorder %s4545_s17, 1 }
   0xd   : > { %s6935_s23 = scalar_select %p5466_p6, 1, 0 }
   0xe   : > { %p5034_p10 = scmp.lt.s32.totalorder %s5377_s15, 2  ;;  %p5473_p11 = por %p115_p7, %p85_p0 }
   0xf   : > { %p5477_p12 = por %p121_p8, %p91_p3  ;;  %s161_s26 = sand.u32 1, %s5373_s14  }
  0x10   : > { %s6936_s24 = scalar_select %p5473_p11, 1, 0 }
  0x11   : > { %s6937_s25 = scalar_select %p5477_p12, 1, 0 }
  0x12   : > { %s4665_s27 = sshll.u32 %s5377_s15, 10  ;;  %s4548_s28 = sshll.u32 %s161_s26, 6 }
  0x13   : > { %s5486_s4 = scalar_lea.hbm %s6886_s2, %s4665_s27  ;;  %s165_s5 = scalar_lea.vmem [#allocation2], %s4548_s28 }
  0x14   : > { %s173_s6 = sshll.u32 %s165_s5, 4  ;;  %p5490_p13 = pnand %p5034_p10, %p5462_p5  ;;  %s5494_s6 = int_to_ptr.vmem [resolvable:$true] %s173_s6 }
  0x15   : > { %s5496_s8 = scalar_lea.sflag [#allocation3], %s161_s26  ;;  %s5285_s9 = scalar_lea.hbm %s5486_s4, 1024 }
  0x16   : > { %p5286_p0 = scmp.ne.s32.totalorder %s5486_s4, %s5285_s9  ;;  %p5287_p1 = pneg %p5490_p13 }
  0x17   : > { %s5290_s17 = scalar_lea.hbm %s6886_s2, 2048  ;;  %p5291_p4 = scmp.lt.s32.totalorder %s5486_s4, %s6886_s2 }
  0x18   : > { %p5288_p2 = pnand %p5287_p1, %p5286_p0  ;;  %p5292_p5 = scmp.lt.s32.totalorder %s5290_s17, %s5285_s9 }
  0x1a   : > { %p5289_p3 = pneg %p5288_p2  ;;  %p5293_p7 = por %p5292_p5, %p5291_p4 }
  0x1c   : > { %p5294_p8 = pnand %p5293_p7, %p5289_p3 }
  0x1e   : > { %5297 = shalt.err (!%p5294_p8)
}
  0x1f   : > { %s5298_s22 = scalar_lea.vmem %s5494_s6, 1024  ;;  %s5379_s26 = smov [#allocation2]  }
  0x20   : > { %p5299_p10 = scmp.ne.s32.totalorder %s5494_s6, %s5298_s22  ;;  %s5303_s27 = sshll.u32 %s5379_s26, 4  ;;  %s5304_s27 = int_to_ptr.vmem [resolvable:$false] %s5303_s27 }
  0x21   : > { %s5305_s28 = scalar_lea.vmem %s5304_s27, 2048  ;;  %p5306_p2 = scmp.lt.s32.totalorder %s5494_s6, %s5304_s27 }
  0x22   : > { %p5301_p9 = pnand %p5299_p10, %p5287_p1  ;;  %p5307_p12 = scmp.lt.s32.totalorder %s5305_s28, %s5298_s22 }
  0x24   : > { %p5302_p0 = pneg %p5301_p9  ;;  %p5308_p11 = por %p5307_p12, %p5306_p2 }
  0x26   : > { %p5309_p6 = pnand %p5308_p11, %p5302_p0 }
  0x28   : > { %5312 = shalt.err (!%p5309_p6)
}
  0x29   : > { %s5380_s29 = smov 128   ;;  %s5381_s30 = smov 8  }
  0x2a   : > { %5029 = dma.hbm_to_vmem [thread:$0]  (!%p5490_p13), %s5486_s4, 1024, %s5494_s6, %s5496_s8, %s5380_s29, %s5380_s29, %s5381_s30  }
  0x2b   : > { %p4552_p9 = scmp.ge.s32.totalorder %s5377_s15, 1  ;;  %p181_p1 = scmp.lt.s32.totalorder %s5377_s15, 3 }
  0x2d   : > { %p182_p3 = pnand %p4552_p9, %p181_p1 }
  0x2f   : > { %185 = sbr.rel (%p182_p3) target bundleno = 1048 (0x418), region = 32 }
  0x34   : > { %s5520_s5 = sand.u32 1, %s5369_s13   ;;  %p6939_p6 = scmp.ne.s32.totalorder %s6935_s23, 0 }
  0x35   : > { %s4553_s9 = sshll.u32 %s5520_s5, 6  ;;  %s188_s10 = scalar_lea.sflag [#allocation3], %s5520_s5 }
  0x36   : > { %s5526_s11 = scalar_lea.vmem [#allocation2], %s4553_s9 }
  0x37   : > { %5356 = dma.done.wait (%p6939_p6), %s188_s10, 1024  }
  0x38   : > { %5358 = vsyncadd (%p6939_p6), %s188_s10, 4294966272  ;;  %s4555_s4 = sshll.u32 %s5444_s16, 2  ;;  %v5382_v0 = vmov 0   ;;  %v5590_v15 = vld [vmem:[%s5526_s11 + $0x8] sm:$0xff]  ;;  %v5383_v16 = vmov 1   ;;  %v5595_v17 = vld [vmem:[%s5526_s11 + $0x20] sm:$0xff]  ;;  %v266_v26 = vlaneseq }
  0x39   : > { %5091 = vset.pattern.permute.xlu1 %v5382_v0  ;;  %5090 = vset.pattern.permute.xlu0 %v5382_v0  ;;  %p227_p11 = scmp.lt.s32.totalorder %s4555_s4, 7  ;;  %v5600_v18 = vld [vmem:[%s5526_s11 + $0x30] sm:$0xff]  ;;  %v5384_v19 = vmov 2   ;;  %v5611_v20 = vld [vmem:[%s5526_s11] sm:$0xff]  ;;  %v5616_v21 = vld [vmem:[%s5526_s11 + $0x18] sm:$0xff]  ;;  %v5385_v23 = vmov 3  }
  0x3a   : > { %v5621_v22 = vld [vmem:[%s5526_s11 + $0x28] sm:$0xff]  ;;  %v5626_v24 = vld [vmem:[%s5526_s11 + $0x38] sm:$0xff]  ;;  %v5635_v25 = vld [vmem:[%s5526_s11 + $0x10] sm:$0xff]  ;;  %v5386_v27 = vmov 4   ;;  %v5662_v28 = vand.u32 127, %v266_v26  ;;  %vm316_vm0 = vcmask 130048  }
  0x3b   : > { %s7157_s4 = smov (!%p227_p11, %s4555_s4), 7  ;;  %v6896_v31 = vmov 0.0   ;;  %v5388_v43 = vmov 5   ;;  %v5389_v60 = vmov 6   ;;  %v5390_v26 = vmov 7   ;;  %s225_s22 = scalar_lea.vmem [#allocation5], %s4553_s9 }
  0x3c   : > { %s4666_s6 = sshll.u32 %s7157_s4, 4  ;;  %v6897_v51 = vmov 8   ;;  %s4669_s26 = sshll.u32 %s5444_s16, 10 }
  0x3d   : > { %s231_s17 = scalar_lea.vmem %s6884_s0, %s4666_s6  ;;  %s5547_s20 = scalar_lea.vmem %s6885_s1, %s4666_s6 }
  0x3e   : > { %v5538_v1 = vld [vmem:[%s231_s17 + $0x10] sm:$0xff]  ;;  %v5540_v2 = vld [vmem:[%s231_s17] sm:$0xff]  ;;  %v5549_v3 = vld [vmem:[%s231_s17 + $0x18] sm:$0xff]  ;;  %s4448_s27 = sshll.u32 %s225_s22, 4  ;;  %s6837_s30 = scalar_lea.hbm %s6887_s3, %s4669_s26  ;;  %s6839_s27 = int_to_ptr.vmem [resolvable:$true] %s4448_s27 }
  0x3f   : > { %275 = vperm.xlu1 %5091, %v5538_v1   ;;  %269 = vperm.xlu0 %5090, %v5540_v2   ;;  %v5551_v4 = vld [vmem:[%s231_s17 + $0x8] sm:$0xff]  ;;  %v5561_v7 = vld [vmem:[%s5547_s20 + $0x18] sm:$0xff]  ;;  %v246_v8 = vld [vmem:[%s231_s17 + $0x20] sm:$0xff]  ;;  %s4434_s16 = scalar_lea.sflag [#allocation4], %s5520_s5  ;;  %s5313_s9 = scalar_lea.vmem %s6839_s27, 1024 }
  0x40   : > { %v5555_v5 = vld [vmem:[%s231_s17 + $0x28] sm:$0xff]  ;;  %4805 = vmatprep.subr.mxu1 %v5561_v7  ;;  %v5566_v9 = vld [vmem:[%s5547_s20] sm:$0xff]  ;;  %v5569_v10 = vld [vmem:[%s5547_s20 + $0x10] sm:$0xff]  ;;  %p5314_p12 = scmp.ne.s32.totalorder %s6839_s27, %s5313_s9  ;;  %p7149_p13 = scmp.ne.s32.totalorder %s6936_s24, 0 }
  0x41   : > { %v5558_v6 = vld [vmem:[%s5547_s20 + $0x8] sm:$0xff]  ;;  %4806 = vmatpush3.msra.mxu1 %v5561_v7  ;;  %v5579_v12 = vld [vmem:[%s5547_s20 + $0x38] sm:$0xff]  ;;  %v248_v14 = vld [vmem:[%s231_s17 + $0x30] sm:$0xff]  ;;  %s5400_s10 = smov [#allocation5]  }
  0x42   : > { %4798 = vmatprep.subr.mxu0 %v5558_v6  ;;  %4807 = vmatprep.subr.mxu1 %v5569_v10  ;;  %v5576_v11 = vld [vmem:[%s5547_s20 + $0x28] sm:$0xff]  ;;  %v5582_v13 = vld [vmem:[%s231_s17 + $0x38] sm:$0xff]  ;;  %v5696_v40 = vld [vmem:[%s5547_s20 + $0x20] sm:$0xff]  ;;  %p5315_p4 = pnand %p5314_p12, %p7149_p13 }
  0x43   : > { %278 = vperm.xlu1 %5091, %v5549_v3   ;;  %272 = vperm.xlu0 %5090, %v5551_v4   ;;  %v5717_v46 = vld [vmem:[%s5547_s20 + $0x30] sm:$0xff] }
  0x44   : > { %4799 = vmatpush3.msra.mxu0 %v5558_v6  ;;  %4808 = vmatpush3.msra.mxu1 %v5569_v10  ;;  %p5316_p5 = pneg %p5315_p4 }
  0x45   : > { %4800 = vmatprep.subr.mxu0 %v5566_v9  ;;  %4819 = vmatprep.subr.mxu1 %v5579_v12 }
  0x46   : > { %4801 = vmatpush3.msra.mxu0 %v5566_v9 }
  0x47   : > { %284 = vperm.xlu1 %5091, %v5555_v5   ;;  %281 = vperm.xlu0 %5090, %v246_v8  }
  0x48   : > { %4812 = vmatprep.subr.mxu0 %v5576_v11 }
  0x4b   : > { %290 = vperm.xlu1 %5091, %v5582_v13   ;;  %287 = vperm.xlu0 %5090, %v248_v14  }
  0x4f   : > { %5092 = vset.pattern.permute.xlu1 %v5383_v16  ;;  %1767 = vperm.xlu0 %5090, %v5590_v15  }
  0x50   : > { %645 = vperm.xlu1 %5092, %v5551_v4  }
  0x53   : > { %1782 = vperm.xlu0 %5090, %v5595_v17  }
  0x54   : > { %648 = vperm.xlu1 %5092, %v5538_v1  }
  0x57   : > { %1792 = vperm.xlu0 %5090, %v5600_v18  }
  0x58   : > { %654 = vperm.xlu1 %5092, %v246_v8  }
  0x5b   : > { %5096 = vset.pattern.permute.xlu0 %v5383_v16 }
  0x5c   : > { %660 = vperm.xlu1 %5092, %v248_v14   ;;  %642 = vperm.xlu0 %5096, %v5540_v2  }
  0x60   : > { %5093 = vset.pattern.permute.xlu1 %v5384_v19  ;;  %651 = vperm.xlu0 %5096, %v5549_v3  }
  0x61   : > { %1014 = vperm.xlu1 %5093, %v5540_v2  }
  0x64   : > { %657 = vperm.xlu0 %5096, %v5555_v5  }
  0x65   : > { %1020 = vperm.xlu1 %5093, %v5538_v1  }
  0x68   : > { %663 = vperm.xlu0 %5096, %v5582_v13  }
  0x69   : > { %1023 = vperm.xlu1 %5093, %v5549_v3  }
  0x6c   : > { %1817 = vperm.xlu0 %5096, %v5611_v20  }
  0x6d   : > { %1029 = vperm.xlu1 %5093, %v5555_v5  }
  0x70   : > { %1829 = vperm.xlu0 %5096, %v5616_v21  }
  0x71   : > { %1035 = vperm.xlu1 %5093, %v5582_v13  }
  0x74   : > { %1837 = vperm.xlu0 %5096, %v5621_v22  }
  0x75   : > { %5094 = vset.pattern.permute.xlu1 %v5385_v23 }
  0x76   : > { %1389 = vperm.xlu1 %5094, %v5551_v4  }
  0x78   : > { %1845 = vperm.xlu0 %5096, %v5626_v24  }
  0x7a   : > { %1392 = vperm.xlu1 %5094, %v5538_v1  }
  0x7c   : > { %5098 = vset.pattern.permute.xlu0 %v5384_v19 }
  0x7d   : > { %1017 = vperm.xlu0 %5098, %v5551_v4  }
  0x7e   : > { %1398 = vperm.xlu1 %5094, %v246_v8  }
  0x81   : > { %1026 = vperm.xlu0 %5098, %v246_v8  }
  0x82   : > { %1404 = vperm.xlu1 %5094, %v248_v14  }
  0x85   : > { %1032 = vperm.xlu0 %5098, %v248_v14  }
  0x86   : > { %5095 = vset.pattern.permute.xlu1 %v5382_v0 }
  0x87   : > { %1762 = vperm.xlu1 %5095, %v5611_v20  }
  0x89   : > { %1869 = vperm.xlu0 %5098, %v5590_v15  }
  0x8b   : > { %1772 = vperm.xlu1 %5095, %v5635_v25  }
  0x8d   : > { %1881 = vperm.xlu0 %5098, %v5595_v17  }
  0x8f   : > { %1777 = vperm.xlu1 %5095, %v5616_v21  }
  0x91   : > { %1889 = vperm.xlu0 %5098, %v5600_v18  }
  0x93   : > { %1787 = vperm.xlu1 %5095, %v5621_v22  }
  0x95   : > { %5100 = vset.pattern.permute.xlu0 %v5385_v23 }
  0x96   : > { %1386 = vperm.xlu0 %5100, %v5540_v2  }
  0x97   : > { %1797 = vperm.xlu1 %5095, %v5626_v24  }
  0x9a   : > { %1395 = vperm.xlu0 %5100, %v5549_v3  }
  0x9b   : > { %5097 = vset.pattern.permute.xlu1 %v5383_v16 }
  0x9c   : > { %1821 = vperm.xlu1 %5097, %v5590_v15  }
  0x9e   : > { %1401 = vperm.xlu0 %5100, %v5555_v5  }
  0xa0   : > { %1825 = vperm.xlu1 %5097, %v5635_v25  }
  0xa2   : > { %1407 = vperm.xlu0 %5100, %v5582_v13  }
  0xa4   : > { %1833 = vperm.xlu1 %5097, %v5595_v17  }
  0xa6   : > { %1913 = vperm.xlu0 %5100, %v5611_v20  }
  0xa8   : > { %1841 = vperm.xlu1 %5097, %v5600_v18  }
  0xaa   : > { %1925 = vperm.xlu0 %5100, %v5616_v21  }
  0xac   : > { %5099 = vset.pattern.permute.xlu1 %v5384_v19 }
  0xad   : > { %1865 = vperm.xlu1 %5099, %v5611_v20  }
  0xae   : > { %1933 = vperm.xlu0 %5100, %v5621_v22  }
  0xb1   : > { %1873 = vperm.xlu1 %5099, %v5635_v25  }
  0xb2   : > { %1941 = vperm.xlu0 %5100, %v5626_v24  }
  0xb5   : > { %1877 = vperm.xlu1 %5099, %v5616_v21  }
  0xb6   : > { %5103 = vset.pattern.permute.xlu0 %v5386_v27 }
  0xb7   : > { %1965 = vperm.xlu0 %5103, %v5590_v15  }
  0xb9   : > { %1885 = vperm.xlu1 %5099, %v5621_v22  }
  0xba   : > { %v276_v29 = vpop.permute.xlu1 %275  ;;  %v270_v30 = vpop.permute.xlu0 %269 }
  0xbb   : > { %1977 = vperm.xlu0 %5103, %v5595_v17   ;;  %vm294_vm1 = vcmp.eq.s32.totalorder %v276_v29, %v5662_v28  ;;  %vm292_vm2 = vcmp.eq.s32.totalorder %v270_v30, %v5662_v28 }
  0xbc   : > { %v5669_v32 = vsel %vm294_vm1, 1.0, %v6896_v31  ;;  %v5672_v33 = vsel %vm292_vm2, 1.0, %v6896_v31 }
  0xbd   : > { %4809 = vmatprep.mubr.msk.f32.mxu1 %vm316_vm0, %v5669_v32  ;;  %1893 = vperm.xlu1 %5099, %v5626_v24  }
  0xbe   : > { %v279_v35 = vpop.permute.xlu1 %278  ;;  %v273_v36 = vpop.permute.xlu0 %272  ;;  %4802 = vmatprep.mubr.msk.f32.mxu0 %vm316_vm0, %v5672_v33 }
  0xbf   : > { %vm295_vm3 = vcmp.eq.s32.totalorder %v279_v35, %v5662_v28  ;;  %vm293_vm4 = vcmp.eq.s32.totalorder %v273_v36, %v5662_v28  ;;  %1985 = vperm.xlu0 %5103, %v5600_v18  }
  0xc0   : > { %v5685_v37 = vsel %vm295_vm3, 1.0, %v6896_v31  ;;  %v5688_v38 = vsel %vm293_vm4, 1.0, %v6896_v31 }
  0xc1   : > { %4810 = vmatmul.mubr.msk.f32.vlgmr.msra.gmra.mxu1 %vm316_vm0, %v5685_v37  ;;  %5101 = vset.pattern.permute.xlu1 %v5385_v23 }
  0xc2   : > { %4803 = vmatmul.mubr.msk.f32.vlgmr.msra.gmra.mxu0 %vm316_vm0, %v5688_v38  ;;  %v285_v41 = vpop.permute.xlu1 %284  ;;  %1917 = vperm.xlu1 %5101, %v5590_v15   ;;  %v282_v42 = vpop.permute.xlu0 %281 }
  0xc3   : > { %vm297_vm5 = vcmp.eq.s32.totalorder %v285_v41, %v5662_v28  ;;  %vm296_vm6 = vcmp.eq.s32.totalorder %v282_v42, %v5662_v28  ;;  %5104 = vset.pattern.permute.xlu0 %v5388_v43  ;;  %4813 = vmatpush3.msra.mxu0 %v5576_v11 }
  0xc4   : > { %v5706_v44 = vsel %vm297_vm5, 1.0, %v6896_v31  ;;  %v5709_v45 = vsel %vm296_vm6, 1.0, %v6896_v31  ;;  %2009 = vperm.xlu0 %5104, %v5611_v20   ;;  %4814 = vmatprep.subr.mxu0 %v5696_v40 }
  0xc5   : > { %6940 = vst [vmem:[#allocation8_spill] sm:$0xff] %v5706_v44  ;;  %6941 = vst [vmem:[#allocation9_spill] sm:$0xff] %v5709_v45  ;;  %4815 = vmatpush3.msra.mxu0 %v5696_v40  ;;  %4816 = vmatprep.mubr.msk.f32.mxu0 %vm316_vm0, %v5709_v45 }
  0xc6   : > { %v291_v47 = vpop.permute.xlu1 %290  ;;  %1921 = vperm.xlu1 %5101, %v5635_v25   ;;  %4817 = vmatmul.mubr.msk.f32.vlgmr.msra.gmra.mxu0 %vm316_vm0, %v5706_v44  ;;  %v288_v48 = vpop.permute.xlu0 %287 }
  0xc7   : > { %vm299_vm7 = vcmp.eq.s32.totalorder %v291_v47, %v5662_v28  ;;  %vm298_vm8 = vcmp.eq.s32.totalorder %v288_v48, %v5662_v28  ;;  %4820 = vmatpush3.msra.mxu1 %v5579_v12  ;;  %4826 = vmatprep.subr.mxu0 %v5558_v6 }
  0xc8   : > { %v5727_v49 = vsel %vm299_vm7, 1.0, %v6896_v31  ;;  %v5730_v50 = vsel %vm298_vm8, 1.0, %v6896_v31  ;;  %4821 = vmatprep.subr.mxu1 %v5717_v46  ;;  %2021 = vperm.xlu0 %5104, %v5616_v21  }
  0xc9   : > { %6942 = vst [vmem:[#allocation10_spill] sm:$0xff] %v5727_v49  ;;  %6943 = vst [vmem:[#allocation11_spill] sm:$0xff] %v5730_v50  ;;  %4822 = vmatpush3.msra.mxu1 %v5717_v46  ;;  %4823 = vmatprep.mubr.msk.f32.mxu1 %vm316_vm0, %v5730_v50  ;;  %v7001_v50 = vpack.i.bf16 %v5669_v32, %v5672_v33 }
  0xca   : > { %1929 = vperm.xlu1 %5101, %v5595_v17   ;;  %4824 = vmatmul.mubr.msk.f32.vlgmr.msra.gmra.mxu1 %vm316_vm0, %v5727_v49  ;;  %v5744_v53 = vpop.permute.xlu0 %1767 }
  0xcb   : > { %6944 = vst [vmem:[#allocation12_spill] sm:$0xff] %v5744_v53  ;;  %v646_v54 = vpop.permute.xlu1 %645  ;;  %4827 = vmatpush3.msra.mxu0 %v5558_v6  ;;  %4833 = vmatprep.subr.mxu1 %v5561_v7 }
  0xcc   : > { %2029 = vperm.xlu0 %5104, %v5621_v22   ;;  %4828 = vmatprep.subr.mxu0 %v5566_v9  ;;  %vm666_vm11 = vcmp.eq.s32.totalorder %v646_v54, %v5662_v28 }
  0xcd   : > { %4829 = vmatpush3.msra.mxu0 %v5566_v9  ;;  %4834 = vmatpush3.msra.mxu1 %v5561_v7  ;;  %v5788_v2 = vsel %vm666_vm11, 1.0, %v6896_v31 }
  0xce   : > { %1937 = vperm.xlu1 %5101, %v5600_v18   ;;  %v5753_v55 = vpop.permute.xlu0 %1782  ;;  %4835 = vmatprep.subr.mxu1 %v5569_v10  ;;  %6948 = vst [vmem:[#allocation16_spill] sm:$0xff] %v5788_v2 }
  0xcf   : > { %v649_v56 = vpop.permute.xlu1 %648  ;;  %4836 = vmatpush3.msra.mxu1 %v5569_v10  ;;  %4840 = vmatprep.subr.mxu0 %v5576_v11 }
  0xd0   : > { %vm667_vm9 = vcmp.eq.s32.totalorder %v649_v56, %v5662_v28  ;;  %2037 = vperm.xlu0 %5104, %v5626_v24   ;;  %4847 = vmatprep.subr.mxu1 %v5579_v12 }
  0xd1   : > { %v5762_v57 = vsel %vm667_vm9, 1.0, %v6896_v31 }
  0xd2   : > { %6945 = vst [vmem:[#allocation13_spill] sm:$0xff] %v5762_v57  ;;  %5102 = vset.pattern.permute.xlu1 %v5386_v27  ;;  %4837 = vmatprep.mubr.msk.f32.mxu1 %vm316_vm0, %v5762_v57  ;;  %v5767_v58 = vpop.permute.xlu0 %1792 }
  0xd3   : > { %6946 = vst [vmem:[#allocation14_spill] sm:$0xff] %v5767_v58  ;;  %v655_v59 = vpop.permute.xlu1 %654  ;;  %1961 = vperm.xlu1 %5102, %v5611_v20   ;;  %v6901_v58 = vmov 14  }
  0xd4   : > { %5107 = vset.pattern.permute.xlu0 %v5389_v60  ;;  %vm669_vm10 = vcmp.eq.s32.totalorder %v655_v59, %v5662_v28 }
  0xd5   : > { %2061 = vperm.xlu0 %5107, %v5590_v15   ;;  %v5778_v63 = vsel %vm669_vm10, 1.0, %v6896_v31 }
  0xd7   : > { %v661_v61 = vpop.permute.xlu1 %660  ;;  %1969 = vperm.xlu1 %5102, %v5635_v25   ;;  %v643_v62 = vpop.permute.xlu0 %642 }
  0xd8   : > { %vm671_vm12 = vcmp.eq.s32.totalorder %v661_v61, %v5662_v28  ;;  %vm665_vm13 = vcmp.eq.s32.totalorder %v643_v62, %v5662_v28 }
  0xd9   : > { %v5781_v0 = vsel %vm671_vm12, 1.0, %v6896_v31  ;;  %v5784_v1 = vsel %vm665_vm13, 1.0, %v6896_v31  ;;  %2073 = vperm.xlu0 %5107, %v5595_v17  }
  0xda   : > { %6947 = vst [vmem:[#allocation15_spill] sm:$0xff] %v5784_v1  ;;  %4830 = vmatprep.mubr.msk.f32.mxu0 %vm316_vm0, %v5784_v1  ;;  %v6998_v49 = vpack.i.bf16 %v5781_v0, %v5778_v63  ;;  %v7019_v1 = vmov 0.0  }
  0xdb   : > { %1973 = vperm.xlu1 %5102, %v5616_v21   ;;  %4831 = vmatmul.mubr.msk.f32.vlgmr.msra.gmra.mxu0 %vm316_vm0, %v5788_v2  ;;  %v652_v5 = vpop.permute.xlu0 %651 }
  0xdc   : > { %vm668_vm14 = vcmp.eq.s32.totalorder %v652_v5, %v5662_v28  ;;  %v1015_v8 = vpop.permute.xlu1 %1014  ;;  %4844 = vmatprep.mubr.msk.f32.mxu0 %vm316_vm0, %v5778_v63  ;;  %4841 = vmatpush3.msra.mxu0 %v5576_v11 }
  0xdd   : > { %v5804_v13 = vsel %vm668_vm14, 1.0, %v6896_v31  ;;  %2081 = vperm.xlu0 %5107, %v5600_v18   ;;  %4842 = vmatprep.subr.mxu0 %v5696_v40  ;;  %vm1037_vm15 = vcmp.eq.s32.totalorder %v1015_v8, %v5662_v28 }
  0xde   : > { %6949 = vst [vmem:[#allocation17_spill] sm:$0xff] %v5804_v13  ;;  %4838 = vmatmul.mubr.msk.f32.vlgmr.msra.gmra.mxu1 %vm316_vm0, %v5804_v13  ;;  %4843 = vmatpush3.msra.mxu0 %v5696_v40  ;;  %v5827_v27 = vsel %vm1037_vm15, 1.0, %v6896_v31 }
  0xdf   : > { %1981 = vperm.xlu1 %5102, %v5621_v22   ;;  %4851 = vmatprep.mubr.msk.f32.mxu1 %vm316_vm0, %v5781_v0  ;;  %v658_v16 = vpop.permute.xlu0 %657  ;;  %6950 = vst [vmem:[#allocation18_spill] sm:$0xff] %v5827_v27 }
  0xe0   : > { %vm670_vm1 = vcmp.eq.s32.totalorder %v658_v16, %v5662_v28  ;;  %v1021_v19 = vpop.permute.xlu1 %1020  ;;  %4848 = vmatpush3.msra.mxu1 %v5579_v12  ;;  %4854 = vmatprep.subr.mxu0 %v5558_v6  ;;  %v6892_v16 = vmov 9  }
  0xe1   : > { %v5821_v23 = vsel %vm670_vm1, 1.0, %v6896_v31  ;;  %vm1039_vm2 = vcmp.eq.s32.totalorder %v1021_v19, %v5662_v28  ;;  %5108 = vset.pattern.permute.xlu0 %v5390_v26  ;;  %4849 = vmatprep.subr.mxu1 %v5717_v46 }
  0xe2   : > { %v5830_v29 = vsel %vm1039_vm2, 1.0, %v6896_v31  ;;  %2105 = vperm.xlu0 %5108, %v5611_v20   ;;  %4845 = vmatmul.mubr.msk.f32.vlgmr.msra.gmra.mxu0 %vm316_vm0, %v5821_v23 }
  0xe3   : > { %6951 = vst [vmem:[#allocation19_spill] sm:$0xff] %v5830_v29  ;;  %1989 = vperm.xlu1 %5102, %v5626_v24   ;;  %4858 = vmatprep.mubr.msk.f32.mxu0 %vm316_vm0, %v5827_v27  ;;  %v664_v35 = vpop.permute.xlu0 %663 }
  0xe4   : > { %vm672_vm3 = vcmp.eq.s32.totalorder %v664_v35, %v5662_v28  ;;  %v1024_v36 = vpop.permute.xlu1 %1023  ;;  %4850 = vmatpush3.msra.mxu1 %v5717_v46  ;;  %4855 = vmatpush3.msra.mxu0 %v5558_v6 }
  0xe5   : > { %v5844_v41 = vsel %vm672_vm3, 1.0, %v6896_v31  ;;  %4861 = vmatprep.subr.mxu1 %v5561_v7  ;;  %4856 = vmatprep.subr.mxu0 %v5566_v9  ;;  %vm1040_vm4 = vcmp.eq.s32.totalorder %v1024_v36, %v5662_v28  ;;  %vm1757_vm3 = vcmp.eq.s32.totalorder %v5662_v28, 32 }
  0xe6   : > { %2117 = vperm.xlu0 %5108, %v5616_v21   ;;  %4852 = vmatmul.mubr.msk.f32.vlgmr.msra.gmra.mxu1 %vm316_vm0, %v5844_v41  ;;  %v5864_v54 = vsel %vm1040_vm4, 1.0, %v6896_v31  ;;  %v6263_v57 = vsel %vm1757_vm3, 1.0, %v7019_v1 }
  0xe7   : > { %5105 = vset.pattern.permute.xlu1 %v5388_v43  ;;  %4862 = vmatpush3.msra.mxu1 %v5561_v7  ;;  %v5856_v47 = vpop.permute.xlu0 %1817  ;;  %6953 = vst [vmem:[#allocation21_spill] sm:$0xff] %v5864_v54 }
  0xe8   : > { %6952 = vst [vmem:[#allocation20_spill] sm:$0xff] %v5856_v47  ;;  %4865 = vmatprep.mubr.msk.f32.mxu1 %vm316_vm0, %v5830_v29  ;;  %2013 = vperm.xlu1 %5105, %v5590_v15   ;;  %v1030_v48 = vpop.permute.xlu1 %1029 }
  0xe9   : > { %4863 = vmatprep.subr.mxu1 %v5569_v10  ;;  %4857 = vmatpush3.msra.mxu0 %v5566_v9  ;;  %vm1042_vm5 = vcmp.eq.s32.totalorder %v1030_v48, %v5662_v28 }
  0xea   : > { %4864 = vmatpush3.msra.mxu1 %v5569_v10  ;;  %2125 = vperm.xlu0 %5108, %v5621_v22   ;;  %v5879_v59 = vsel %vm1042_vm5, 1.0, %v6896_v31 }
  0xeb   : > { %4866 = vmatmul.mubr.msk.f32.vlgmr.msra.gmra.mxu1 %vm316_vm0, %v5864_v54  ;;  %v5871_v43 = vpop.permute.xlu0 %1829  ;;  %4868 = vmatprep.subr.mxu0 %v5576_v11  ;;  %v6916_v54 = vmov 12  }
  0xec   : > { %6954 = vst [vmem:[#allocation22_spill] sm:$0xff] %v5871_v43  ;;  %2017 = vperm.xlu1 %5105, %v5635_v25   ;;  %v1036_v56 = vpop.permute.xlu1 %1035  ;;  %4875 = vmatprep.subr.mxu1 %v5579_v12 }
  0xed   : > { %vm1044_vm6 = vcmp.eq.s32.totalorder %v1036_v56, %v5662_v28  ;;  %4876 = vmatpush3.msra.mxu1 %v5579_v12 }
  0xee   : > { %v5882_v61 = vsel %vm1044_vm6, 1.0, %v6896_v31  ;;  %2133 = vperm.xlu0 %5108, %v5626_v24   ;;  %4877 = vmatprep.subr.mxu1 %v5717_v46 }
  0xef   : > { %v5888_v5 = vpop.permute.xlu0 %1837  ;;  %4878 = vmatpush3.msra.mxu1 %v5717_v46 }
  0xf0   : > { %6955 = vst [vmem:[#allocation23_spill] sm:$0xff] %v5888_v5  ;;  %2025 = vperm.xlu1 %5105, %v5595_v17   ;;  %4889 = vmatprep.subr.mxu1 %v5561_v7 }
  0xf1   : > { %v5893_v8 = vpop.permute.xlu1 %1389 }
  0xf2   : > { %5112 = vset.pattern.permute.xlu0 %v6892_v16  ;;  %vm1410_vm13 = vcmp.eq.s32.totalorder %v5893_v8, %v5662_v28 }
  0xf3   : > { %3117 = vperm.xlu0 %5112, %v5616_v21   ;;  %v5897_v19 = vpop.permute.xlu0 %1845  ;;  %v5995_v42 = vsel %vm1410_vm13, 1.0, %v6896_v31 }
  0xf4   : > { %6956 = vst [vmem:[#allocation24_spill] sm:$0xff] %v5897_v19  ;;  %2033 = vperm.xlu1 %5105, %v5600_v18  }
  0xf5   : > { %v1393_v35 = vpop.permute.xlu1 %1392 }
  0xf6   : > { %vm1411_vm11 = vcmp.eq.s32.totalorder %v1393_v35, %v5662_v28 }
  0xf7   : > { %3105 = vperm.xlu0 %5112, %v5611_v20   ;;  %v5953_v35 = vsel %vm1411_vm11, 1.0, %v6896_v31 }
  0xf8   : > { %5106 = vset.pattern.permute.xlu1 %v5389_v60  ;;  %v1018_v36 = vpop.permute.xlu0 %1017 }
  0xf9   : > { %vm1038_vm7 = vcmp.eq.s32.totalorder %v1018_v36, %v5662_v28  ;;  %2057 = vperm.xlu1 %5106, %v5611_v20   ;;  %v1399_v48 = vpop.permute.xlu1 %1398 }
  0xfa   : > { %v5905_v56 = vsel %vm1038_vm7, 1.0, %v6896_v31  ;;  %vm1413_vm8 = vcmp.eq.s32.totalorder %v1399_v48, %v5662_v28 }
  0xfb   : > { %6957 = vst [vmem:[#allocation25_spill] sm:$0xff] %v5905_v56  ;;  %5114 = vset.pattern.permute.xlu0 %v6897_v51  ;;  %4859 = vmatmul.mubr.msk.f32.vlgmr.msra.gmra.mxu0 %vm316_vm0, %v5905_v56  ;;  %v5924_v48 = vsel %vm1413_vm8, 1.0, %v6896_v31 }
  0xfc   : > { %3057 = vperm.xlu0 %5114, %v5611_v20   ;;  %v1027_v60 = vpop.permute.xlu0 %1026  ;;  %4869 = vmatpush3.msra.mxu0 %v5576_v11  ;;  %6958 = vst [vmem:[#allocation26_spill] sm:$0xff] %v5924_v48 }
  0xfd   : > { %vm1041_vm9 = vcmp.eq.s32.totalorder %v1027_v60, %v5662_v28  ;;  %2065 = vperm.xlu1 %5106, %v5635_v25   ;;  %v1405_v36 = vpop.permute.xlu1 %1404  ;;  %4870 = vmatprep.subr.mxu0 %v5696_v40 }
  0xfe   : > { %v5919_v30 = vsel %vm1041_vm9, 1.0, %v6896_v31  ;;  %vm1415_vm10 = vcmp.eq.s32.totalorder %v1405_v36, %v5662_v28  ;;  %4871 = vmatpush3.msra.mxu0 %v5696_v40 }
  0xff   : > { %v5927_v52 = vsel %vm1415_vm10, 1.0, %v6896_v31  ;;  %4872 = vmatprep.mubr.msk.f32.mxu0 %vm316_vm0, %v5919_v30  ;;  %4882 = vmatprep.subr.mxu0 %v5558_v6 }
 0x100   : > { %6959 = vst [vmem:[#allocation27_spill] sm:$0xff] %v5927_v52  ;;  %3069 = vperm.xlu0 %5114, %v5616_v21   ;;  %4873 = vmatmul.mubr.msk.f32.vlgmr.msra.gmra.mxu0 %vm316_vm0, %v5879_v59  ;;  %v1033_v36 = vpop.permute.xlu0 %1032 }
 0x101   : > { %vm1043_vm12 = vcmp.eq.s32.totalorder %v1033_v36, %v5662_v28  ;;  %2069 = vperm.xlu1 %5106, %v5616_v21   ;;  %4883 = vmatpush3.msra.mxu0 %v5558_v6 }
 0x102   : > { %v5942_v14 = vsel %vm1043_vm12, 1.0, %v6896_v31  ;;  %v5944_v4 = vpop.permute.xlu1 %1762  ;;  %4884 = vmatprep.subr.mxu0 %v5566_v9 }
 0x103   : > { %6960 = vst [vmem:[#allocation28_spill] sm:$0xff] %v5944_v4  ;;  %4879 = vmatprep.mubr.msk.f32.mxu1 %vm316_vm0, %v5942_v14  ;;  %4885 = vmatpush3.msra.mxu0 %v5566_v9  ;;  %v6890_v9 = vmov 10   ;;  %v7006_v32 = vpack.i.bf16 %v5942_v14, %v5919_v30 }
 0x104   : > { %3081 = vperm.xlu0 %5114, %v5600_v18   ;;  %4880 = vmatmul.mubr.msk.f32.vlgmr.msra.gmra.mxu1 %vm316_vm0, %v5882_v61  ;;  %v5958_v6 = vpop.permute.xlu0 %1869 }
 0x105   : > { %6961 = vst [vmem:[#allocation29_spill] sm:$0xff] %v5958_v6  ;;  %2077 = vperm.xlu1 %5106, %v5621_v22   ;;  %4893 = vmatprep.mubr.msk.f32.mxu1 %vm316_vm0, %v5953_v35  ;;  %v6899_v6 = vmov 13  }
 0x106   : > { %v5963_v36 = vpop.permute.xlu1 %1772  ;;  %4890 = vmatpush3.msra.mxu1 %v5561_v7  ;;  %4896 = vmatprep.subr.mxu0 %v5576_v11 }
 0x107   : > { %6962 = vst [vmem:[#allocation30_spill] sm:$0xff] %v5963_v36  ;;  %4891 = vmatprep.subr.mxu1 %v5569_v10  ;;  %v6991_v36 = vmov 11  }
 0x108   : > { %5118 = vset.pattern.permute.xlu0 %v6890_v9  ;;  %v5969_v62 = vpop.permute.xlu0 %1881  ;;  %4892 = vmatpush3.msra.mxu1 %v5569_v10 }
 0x109   : > { %2085 = vperm.xlu1 %5106, %v5626_v24   ;;  %3157 = vperm.xlu0 %5118, %v5590_v15  }
 0x10a   : > { %v5974_v60 = vpop.permute.xlu1 %1777  ;;  %4903 = vmatprep.subr.mxu1 %v5579_v12 }
 0x10b   : > { %6963 = vst [vmem:[#allocation31_spill] sm:$0xff] %v5974_v60 }
 0x10c   : > { %v5977_v7 = vpop.permute.xlu0 %1889 }
 0x10d   : > { %6964 = vst [vmem:[#allocation32_spill] sm:$0xff] %v5977_v7  ;;  %5109 = vset.pattern.permute.xlu1 %v5390_v26  ;;  %3153 = vperm.xlu0 %5118, %v5611_v20  }
 0x10e   : > { %2109 = vperm.xlu1 %5109, %v5590_v15   ;;  %v5982_v39 = vpop.permute.xlu1 %1787 }
 0x111   : > { %3173 = vperm.xlu0 %5118, %v5621_v22   ;;  %v1387_v10 = vpop.permute.xlu0 %1386 }
 0x112   : > { %vm1409_vm14 = vcmp.eq.s32.totalorder %v1387_v10, %v5662_v28  ;;  %2113 = vperm.xlu1 %5109, %v5635_v25   ;;  %v5989_v34 = vpop.permute.xlu1 %1797 }
 0x113   : > { %6965 = vst [vmem:[#allocation33_spill] sm:$0xff] %v5989_v34  ;;  %v5992_v26 = vsel %vm1409_vm14, 1.0, %v6896_v31 }
 0x114   : > { %4886 = vmatprep.mubr.msk.f32.mxu0 %vm316_vm0, %v5992_v26 }
 0x115   : > { %3169 = vperm.xlu0 %5118, %v5595_v17   ;;  %4887 = vmatmul.mubr.msk.f32.vlgmr.msra.gmra.mxu0 %vm316_vm0, %v5995_v42  ;;  %v1396_v8 = vpop.permute.xlu0 %1395 }
 0x116   : > { %vm1412_vm15 = vcmp.eq.s32.totalorder %v1396_v8, %v5662_v28  ;;  %2121 = vperm.xlu1 %5109, %v5595_v17   ;;  %4900 = vmatprep.mubr.msk.f32.mxu0 %vm316_vm0, %v5924_v48  ;;  %v6894_v8 = vmov 11  }
 0x117   : > { %v6009_v10 = vsel %vm1412_vm15, 1.0, %v6896_v31  ;;  %v6011_v3 = vpop.permute.xlu1 %1821  ;;  %4897 = vmatpush3.msra.mxu0 %v5576_v11 }
 0x118   : > { %6966 = vst [vmem:[#allocation34_spill] sm:$0xff] %v6011_v3  ;;  %4894 = vmatmul.mubr.msk.f32.vlgmr.msra.gmra.mxu1 %vm316_vm0, %v6009_v10  ;;  %4898 = vmatprep.subr.mxu0 %v5696_v40 }
 0x119   : > { %5126 = vset.pattern.permute.xlu0 %v6894_v8  ;;  %4907 = vmatprep.mubr.msk.f32.mxu1 %vm316_vm0, %v5927_v52  ;;  %v1402_v16 = vpop.permute.xlu0 %1401 }
 0x11a   : > { %vm1414_vm1 = vcmp.eq.s32.totalorder %v1402_v16, %v5662_v28  ;;  %2129 = vperm.xlu1 %5109, %v5600_v18   ;;  %3213 = vperm.xlu0 %5126, %v5616_v21  }
 0x11b   : > { %v6026_v11 = vsel %vm1414_vm1, 1.0, %v6896_v31  ;;  %v6028_v9 = vpop.permute.xlu1 %1825  ;;  %4899 = vmatpush3.msra.mxu0 %v5696_v40  ;;  %4904 = vmatpush3.msra.mxu1 %v5579_v12 }
 0x11c   : > { %6967 = vst [vmem:[#allocation35_spill] sm:$0xff] %v6026_v11  ;;  %6968 = vst [vmem:[#allocation36_spill] sm:$0xff] %v6028_v9  ;;  %4901 = vmatmul.mubr.msk.f32.vlgmr.msra.gmra.mxu0 %vm316_vm0, %v6026_v11  ;;  %4905 = vmatprep.subr.mxu1 %v5717_v46  ;;  %v6982_v9 = vmov 10  }
 0x11d   : > { %v1408_v8 = vpop.permute.xlu0 %1407  ;;  %4906 = vmatpush3.msra.mxu1 %v5717_v46 }
 0x11e   : > { %vm1416_vm2 = vcmp.eq.s32.totalorder %v1408_v8, %v5662_v28  ;;  %5110 = vset.pattern.permute.xlu1 %v6897_v51  ;;  %3209 = vperm.xlu0 %5126, %v5635_v25   ;;  %v6973_v51 = vmov 9  }
 0x11f   : > { %v6040_v16 = vsel %vm1416_vm2, 1.0, %v6896_v31  ;;  %3061 = vperm.xlu1 %5110, %v5590_v15   ;;  %v6043_v12 = vpop.permute.xlu1 %1833 }
 0x120   : > { %6969 = vst [vmem:[#allocation37_spill] sm:$0xff] %v6040_v16  ;;  %4908 = vmatmul.mubr.msk.f32.vlgmr.msra.gmra.mxu1 %vm316_vm0, %v6040_v16 }
 0x121   : > { %v6049_v46 = vpop.permute.xlu0 %1913 }
 0x122   : > { %6970 = vst [vmem:[#allocation38_spill] sm:$0xff] %v6049_v46  ;;  %3229 = vperm.xlu0 %5126, %v5626_v24   ;;  %v6976_v46 = vmov 8  }
 0x123   : > { %3065 = vperm.xlu1 %5110, %v5635_v25   ;;  %v6053_v8 = vpop.permute.xlu1 %1841 }
 0x124   : > { %6971 = vst [vmem:[#allocation39_spill] sm:$0xff] %v6053_v8 }
 0x125   : > { %v6055_v31 = vpop.permute.xlu0 %1925 }
 0x126   : > { %6972 = vst [vmem:[#allocation40_spill] sm:$0xff] %v6055_v31  ;;  %3225 = vperm.xlu0 %5126, %v5600_v18  }
 0x127   : > { %5111 = vset.pattern.permute.xlu1 %v6973_v51 }
 0x128   : > { %3109 = vperm.xlu1 %5111, %v5590_v15   ;;  %v6060_v40 = vpop.permute.xlu1 %1865 }
 0x129   : > { %6974 = vst [vmem:[#allocation41_spill] sm:$0xff] %v6060_v40  ;;  %v6062_v7 = vpop.permute.xlu0 %1933 }
 0x12a   : > { %6975 = vst [vmem:[#allocation42_spill] sm:$0xff] %v6062_v7  ;;  %5132 = vset.pattern.permute.xlu0 %v6899_v6 }
 0x12b   : > { %3761 = vperm.xlu0 %5132, %v5590_v15  }
 0x12c   : > { %5113 = vset.pattern.permute.xlu1 %v6976_v46  ;;  %v6067_v8 = vpop.permute.xlu1 %1873 }
 0x12d   : > { %6977 = vst [vmem:[#allocation43_spill] sm:$0xff] %v6067_v8  ;;  %3077 = vperm.xlu1 %5113, %v5621_v22   ;;  %v6070_v31 = vpop.permute.xlu0 %1941 }
 0x12e   : > { %6978 = vst [vmem:[#allocation44_spill] sm:$0xff] %v6070_v31 }
 0x12f   : > { %3757 = vperm.xlu0 %5132, %v5611_v20  }
 0x130   : > { %v6073_v19 = vpop.permute.xlu1 %1877 }
 0x131   : > { %6979 = vst [vmem:[#allocation45_spill] sm:$0xff] %v6073_v19  ;;  %3085 = vperm.xlu1 %5113, %v5626_v24  }
 0x132   : > { %v6076_v40 = vpop.permute.xlu0 %1965 }
 0x133   : > { %3777 = vperm.xlu0 %5132, %v5621_v22  }
 0x134   : > { %v6079_v6 = vpop.permute.xlu1 %1885 }
 0x135   : > { %6980 = vst [vmem:[#allocation46_spill] sm:$0xff] %v6079_v6  ;;  %5115 = vset.pattern.permute.xlu1 %v6973_v51 }
 0x136   : > { %3113 = vperm.xlu1 %5115, %v5635_v25   ;;  %v6083_v8 = vpop.permute.xlu0 %1977 }
 0x137   : > { %3773 = vperm.xlu0 %5132, %v5595_v17  }
 0x138   : > { %v6086_v31 = vpop.permute.xlu1 %1893 }
 0x139   : > { %6981 = vst [vmem:[#allocation47_spill] sm:$0xff] %v6086_v31 }
 0x13a   : > { %5116 = vset.pattern.permute.xlu1 %v6982_v9  ;;  %v6089_v19 = vpop.permute.xlu0 %1985 }
 0x13b   : > { %6983 = vst [vmem:[#allocation48_spill] sm:$0xff] %v6089_v19  ;;  %3165 = vperm.xlu1 %5116, %v5616_v21   ;;  %5140 = vset.pattern.permute.xlu0 %v6901_v58 }
 0x13c   : > { %3817 = vperm.xlu0 %5140, %v5616_v21  }
 0x13d   : > { %v6094_v43 = vpop.permute.xlu1 %1917 }
 0x13e   : > { %6984 = vst [vmem:[#allocation49_spill] sm:$0xff] %v6094_v43 }
 0x13f   : > { %5117 = vset.pattern.permute.xlu1 %v6976_v46  ;;  %v6097_v47 = vpop.permute.xlu0 %2009 }
 0x140   : > { %3073 = vperm.xlu1 %5117, %v5595_v17   ;;  %3813 = vperm.xlu0 %5140, %v5635_v25  }
 0x141   : > { %v6101_v31 = vpop.permute.xlu1 %1921 }
 0x142   : > { %6985 = vst [vmem:[#allocation50_spill] sm:$0xff] %v6101_v31  ;;  %v6903_v31 = vmov 15  }
 0x143   : > { %v6103_v3 = vpop.permute.xlu0 %2021 }
 0x144   : > { %5119 = vset.pattern.permute.xlu1 %v6973_v51  ;;  %3833 = vperm.xlu0 %5140, %v5626_v24  }
 0x145   : > { %3125 = vperm.xlu1 %5119, %v5621_v22   ;;  %v6108_v58 = vpop.permute.xlu1 %1929 }
 0x146   : > { %6986 = vst [vmem:[#allocation51_spill] sm:$0xff] %v6108_v58 }
 0x147   : > { %v6110_v43 = vpop.permute.xlu0 %2029 }
 0x148   : > { %6987 = vst [vmem:[#allocation52_spill] sm:$0xff] %v6110_v43  ;;  %3821 = vperm.xlu0 %5140, %v5595_v17  }
 0x149   : > { %3133 = vperm.xlu1 %5119, %v5626_v24   ;;  %v6114_v46 = vpop.permute.xlu1 %1937 }
 0x14a   : > { %6988 = vst [vmem:[#allocation53_spill] sm:$0xff] %v6114_v46 }
 0x14b   : > { %v6116_v19 = vpop.permute.xlu0 %2037 }
 0x14c   : > { %6989 = vst [vmem:[#allocation54_spill] sm:$0xff] %v6116_v19  ;;  %5145 = vset.pattern.permute.xlu0 %v6903_v31 }
 0x14d   : > { %5120 = vset.pattern.permute.xlu1 %v6982_v9  ;;  %3873 = vperm.xlu0 %5145, %v5621_v22  }
 0x14e   : > { %3161 = vperm.xlu1 %5120, %v5635_v25   ;;  %v6122_v58 = vpop.permute.xlu1 %1961 }
 0x150   : > { %v6124_v34 = vpop.permute.xlu0 %2061 }
 0x151   : > { %6990 = vst [vmem:[#allocation55_spill] sm:$0xff] %v6124_v34  ;;  %3877 = vperm.xlu0 %5145, %v5600_v18  }
 0x152   : > { %5121 = vset.pattern.permute.xlu1 %v6991_v36  ;;  %v6128_v46 = vpop.permute.xlu1 %1969 }
 0x153   : > { %3205 = vperm.xlu1 %5121, %v5590_v15  }
 0x154   : > { %v6131_v4 = vpop.permute.xlu0 %2073 }
 0x156   : > { %v6133_v31 = vpop.permute.xlu1 %1973 }
 0x157   : > { %5122 = vset.pattern.permute.xlu1 %v6973_v51 }
 0x158   : > { %3121 = vperm.xlu1 %5122, %v5595_v17   ;;  %v6137_v53 = vpop.permute.xlu0 %2081 }
 0x159   : > { %6992 = vst [vmem:[#allocation56_spill] sm:$0xff] %v6137_v53 }
 0x15a   : > { %v6139_v60 = vpop.permute.xlu1 %1981 }
 0x15c   : > { %3129 = vperm.xlu1 %5122, %v5600_v18  }
 0x15d   : > { %v6142_v11 = vpop.permute.xlu0 %2105 }
 0x15e   : > { %6993 = vst [vmem:[#allocation57_spill] sm:$0xff] %v6142_v11  ;;  %v6144_v16 = vpop.permute.xlu1 %1989  ;;  %v6291_v11 = vld [vmem:[%s5526_s11 + $0x30] sm:$0xff] }
 0x160   : > { %5123 = vset.pattern.permute.xlu1 %v6982_v9 }
 0x161   : > { %3181 = vperm.xlu1 %5123, %v5626_v24   ;;  %v6148_v48 = vpop.permute.xlu0 %2117 }
 0x162   : > { %6994 = vst [vmem:[#allocation58_spill] sm:$0xff] %v6148_v48 }
 0x163   : > { %v6150_v52 = vpop.permute.xlu1 %2013 }
 0x165   : > { %5124 = vset.pattern.permute.xlu1 %v6991_v36  ;;  %v6153_v51 = vpop.permute.xlu0 %2125 }
 0x166   : > { %6995 = vst [vmem:[#allocation59_spill] sm:$0xff] %v6153_v51  ;;  %3201 = vperm.xlu1 %5124, %v5611_v20  }
 0x167   : > { %v6156_v53 = vpop.permute.xlu1 %2017 }
 0x169   : > { %v6158_v56 = vpop.permute.xlu0 %2133 }
 0x16a   : > { %6996 = vst [vmem:[#allocation60_spill] sm:$0xff] %v6158_v56  ;;  %5125 = vset.pattern.permute.xlu1 %v6916_v54  ;;  %v6999_v54 = vpack.i.bf16 %v5844_v41, %v5821_v23 }
 0x16b   : > { %3713 = vperm.xlu1 %5125, %v5590_v15   ;;  %v6162_v27 = vpop.permute.xlu1 %2025 }
 0x16e   : > { %v6164_v29 = vpop.permute.xlu0 %3117 }
 0x16f   : > { %3721 = vperm.xlu1 %5125, %v5616_v21   ;;  %v6167_v44 = vpop.permute.xlu1 %2033  ;;  %5176 = vxpose.xlu0.b32.start [1/2] (short) (narrow) %v6998_v49, 16  ;;  %v7003_v49 = vpack.i.bf16 %v5685_v37, %v5688_v38  ;;  %v7008_v37 = vpack.i.bf16 %v5882_v61, %v5879_v59  ;;  %v7013_v61 = vpack.i.bf16 %v6009_v10, %v5995_v42 }
 0x170   : > { %6997 = vst [vmem:[#allocation61_spill] sm:$0xff] %v6167_v44 }
 0x172   : > { %v3106_v45 = vpop.permute.xlu0 %3105 }
 0x173   : > { %5127 = vset.pattern.permute.xlu1 %v6982_v9  ;;  %5178 = vxpose.xlu0.b32.end [2/2] (short) (narrow) %v6999_v54, 16  ;;  %v7010_v54 = vmov 13  }
 0x174   : > { %3177 = vperm.xlu1 %5127, %v5600_v18   ;;  %v6177_v15 = vpop.permute.xlu1 %2057  ;;  %v7005_v18 = vmov 12  }
 0x175   : > { %7000 = vst [vmem:[#allocation62_spill] sm:$0xff] %v6177_v15 }
 0x177   : > { %5190 = vxpose.xlu0.b32.start [1/2] (short) (narrow) %v7001_v50, 16  ;;  %v3058_v44 = vpop.permute.xlu0 %3057 }
 0x178   : > { %5128 = vset.pattern.permute.xlu1 %v6991_v36  ;;  %v6183_v63 = vpop.permute.xlu1 %2065 }
 0x179   : > { %7002 = vst [vmem:[#allocation63_spill] sm:$0xff] %v6183_v63  ;;  %3221 = vperm.xlu1 %5128, %v5621_v22  }
 0x17b   : > { %5192 = vxpose.xlu0.b32.end [2/2] (short) (narrow) %v7003_v49, 16  ;;  %v3070_v0 = vpop.permute.xlu0 %3069 }
 0x17c   : > { %v6189_v23 = vpop.permute.xlu1 %2069 }
 0x17d   : > { %7004 = vst [vmem:[#allocation64_spill] sm:$0xff] %v6189_v23  ;;  %5129 = vset.pattern.permute.xlu1 %v7005_v18 }
 0x17e   : > { %3709 = vperm.xlu1 %5129, %v5611_v20   ;;  %v7011_v20 = vpack.i.bf16 %v5953_v35, %v5992_v26 }
 0x17f   : > { %5218 = vxpose.xlu0.b32.start [1/2] (short) (narrow) %v7006_v32, 16  ;;  %v6196_v33 = vpop.permute.xlu0 %3081 }
 0x180   : > { %v6198_v50 = vpop.permute.xlu1 %2077 }
 0x181   : > { %7007 = vst [vmem:[#allocation65_spill] sm:$0xff] %v6198_v50  ;;  %v6236_v49 = vpop.f32.mrf.mxu1 }
 0x182   : > { %3717 = vperm.xlu1 %5129, %v5635_v25   ;;  %v6218_v59 = vpop.f32.mrf.mxu0  ;;  %v3091_v2 = vmul.f32 %v6236_v49, %v3070_v0 }
 0x183   : > { %5220 = vxpose.xlu0.b32.end [2/2] (short) (narrow) %v7008_v37, 16  ;;  %v6245_v32 = vpop.f32.mrf.mxu1 }
 0x184   : > { %v6204_v38 = vpop.permute.xlu1 %2085  ;;  %v6206_v41 = vpop.permute.xlu0 %3157 }
 0x185   : > { %7009 = vst [vmem:[#allocation66_spill] sm:$0xff] %v6204_v38  ;;  %v6228_v35 = vpop.f32.mrf.mxu0  ;;  %v5277_v38 = vld [vmem:[%s5526_s11 + $0x8] sm:$0xff] }
 0x186   : > { %5130 = vset.pattern.permute.xlu1 %v7010_v54 }
 0x187   : > { %3769 = vperm.xlu1 %5130, %v5616_v21   ;;  %5232 = vxpose.xlu0.b32.start [1/2] (short) (narrow) %v7011_v20, 16  ;;  %v6238_v42 = vpop.f32.mrf.mxu0 }
 0x188   : > { %v6215_v30 = vpop.permute.xlu0 %3153 }
 0x189   : > { %v6213_v14 = vpop.permute.xlu1 %2109  ;;  %v6249_v20 = vpop.f32.mrf.mxu0 }
 0x18a   : > { %7012 = vst [vmem:[#allocation67_spill] sm:$0xff] %v6213_v14  ;;  %v6247_v37 = vpop.f32.mrf.mxu1 }
 0x18b   : > { %5131 = vset.pattern.permute.xlu1 %v6991_v36  ;;  %5234 = vxpose.xlu0.b32.end [2/2] (short) (narrow) %v7013_v61, 16  ;;  %v3088_v61 = vmul.f32 %v3058_v44, %v6228_v35  ;;  %v7021_v44 = vmov 14  }
 0x18c   : > { %3217 = vperm.xlu1 %5131, %v5595_v17   ;;  %v6226_v21 = vpop.permute.xlu0 %3173  ;;  %v6260_v13 = vpop.f32.mrf.mxu1 }
 0x18d   : > { %v6224_v9 = vpop.permute.xlu1 %2113  ;;  %v3096_v28 = vadd.f32 %v6263_v57, %v3088_v61 }
 0x18e   : > { %7014 = vst [vmem:[#allocation68_spill] sm:$0xff] %v6224_v9 }
 0x190   : > { %5133 = vset.pattern.permute.xlu1 %v7005_v18  ;;  %v6234_v36 = vpop.permute.xlu0 %3169 }
 0x191   : > { %3729 = vperm.xlu1 %5133, %v5621_v22   ;;  %v6232_v26 = vpop.permute.xlu1 %2121 }
 0x192   : > { %7015 = vst [vmem:[#allocation69_spill] sm:$0xff] %v6232_v26 }
 0x195   : > { %3737 = vperm.xlu1 %5133, %v5626_v24   ;;  %v6241_v17 = vpop.permute.xlu1 %2129  ;;  %v6243_v10 = vpop.permute.xlu0 %3213 }
 0x196   : > { %7016 = vst [vmem:[#allocation70_spill] sm:$0xff] %v6241_v17  ;;  %7017 = vst [vmem:[#allocation71_spill] sm:$0xff] %v6243_v10  ;;  %v6284_v10 = vld [vmem:[%s5526_s11 + $0x20] sm:$0xff] }
 0x197   : > { %7023 = vst [vmem:[#allocation75_spill] sm:$0xff] %v6284_v10 }
 0x199   : > { %5134 = vset.pattern.permute.xlu1 %v7010_v54  ;;  %v6252_v22 = vpop.permute.xlu0 %3209 }
 0x19a   : > { %7018 = vst [vmem:[#allocation72_spill] sm:$0xff] %v6252_v22  ;;  %3765 = vperm.xlu1 %5134, %v5635_v25   ;;  %v3062_v17 = vpop.permute.xlu1 %3061  ;;  %v3099_v22 = vadd.f32 %v6263_v57, %v3091_v2 }
 0x19b   : > { %v6257_v26 = vpop.f32.mrf.mxu0  ;;  %v3089_v14 = vmul.f32 %v6218_v59, %v3062_v17 }
 0x19d   : > { %v6265_v56 = vpop.f32.mrf.mxu0  ;;  %v6267_v51 = vpop.permute.xlu0 %3229 }
 0x19e   : > { %7020 = vst [vmem:[#allocation73_spill] sm:$0xff] %v6267_v51  ;;  %5135 = vset.pattern.permute.xlu1 %v7021_v44  ;;  %v6271_v25 = vpop.permute.xlu1 %3065  ;;  %v6273_v7 = vpop.f32.mrf.mxu1  ;;  %v3136_v0 = vmul.f32 %v3106_v45, %v6265_v56 }
 0x19f   : > { %3809 = vperm.xlu1 %5135, %v5277_v38   ;;  %v3139_v1 = vmul.f32 %v6273_v7, %v6164_v29 }
 0x1a0   : > { %v3144_v61 = vadd.f32 %v3136_v0, %v3096_v28 }
 0x1a1   : > { %v6280_v9 = vpop.permute.xlu0 %3225  ;;  %v3147_v51 = vadd.f32 %v3139_v1, %v3099_v22 }
 0x1a2   : > { %7022 = vst [vmem:[#allocation74_spill] sm:$0xff] %v6280_v9  ;;  %v6300_v0 = vpop.f32.mrf.mxu0 }
 0x1a3   : > { %5136 = vset.pattern.permute.xlu1 %v7005_v18  ;;  %v3110_v6 = vpop.permute.xlu1 %3109  ;;  %v6297_v18 = vpop.f32.mrf.mxu1 }
 0x1a4   : > { %3725 = vperm.xlu1 %5136, %v6284_v10   ;;  %v6316_v10 = vld [vmem:[%s5526_s11] sm:$0xff]  ;;  %v3137_v15 = vmul.f32 %v6257_v26, %v3110_v6 }
 0x1a6   : > { %v3762_v48 = vpop.permute.xlu0 %3761 }
 0x1a7   : > { %v6288_v45 = vmul.f32 %v6257_v26, %v3762_v48  ;;  %v6303_v48 = vpop.f32.mrf.mxu1 }
 0x1a8   : > { %3733 = vperm.xlu1 %5136, %v6291_v11   ;;  %v3078_v2 = vpop.permute.xlu1 %3077 }
 0x1a9   : > { %7024 = vst [vmem:[#allocation76_spill] sm:$0xff] %v6288_v45  ;;  %v6308_v45 = vpop.f32.mrf.mxu0 }
 0x1aa   : > { %v3758_v29 = vpop.permute.xlu0 %3757 }
 0x1ab   : > { %v6295_v22 = vmul.f32 %v3758_v29, %v6265_v56 }
 0x1ac   : > { %5137 = vset.pattern.permute.xlu1 %v7010_v54  ;;  %v3086_v28 = vpop.permute.xlu1 %3085 }
 0x1ad   : > { %7025 = vst [vmem:[#allocation77_spill] sm:$0xff] %v6295_v22  ;;  %3785 = vperm.xlu1 %5137, %v5626_v24   ;;  %v6313_v22 = vpop.f32.mrf.mxu1 }
 0x1ae   : > { %v3778_v1 = vpop.permute.xlu0 %3777  ;;  %7027 = vst [vmem:[#allocation79_spill] sm:$0xff] %v6313_v22 }
 0x1af   : > { %v6306_v9 = vmul.f32 %v6300_v0, %v3778_v1  ;;  %v6322_v19 = vpop.f32.mrf.mxu1  ;;  %v7029_v1 = vmov 15  }
 0x1b1   : > { %7026 = vst [vmem:[#allocation78_spill] sm:$0xff] %v6306_v9  ;;  %5138 = vset.pattern.permute.xlu1 %v7021_v44  ;;  %v6311_v29 = vpop.permute.xlu1 %3113  ;;  %v6339_v17 = vpop.f32.mrf.mxu1 }
 0x1b2   : > { %3805 = vperm.xlu1 %5138, %v6316_v10   ;;  %v3774_v24 = vpop.permute.xlu0 %3773 }
 0x1b3   : > { %v6320_v50 = vmul.f32 %v3774_v24, %v6308_v45  ;;  %v3097_v24 = vadd.f32 %v6263_v57, %v3089_v14  ;;  %v1996_v14 = vmul.f32 %v6083_v8, %v6249_v20 }
 0x1b5   : > { %7028 = vst [vmem:[#allocation80_spill] sm:$0xff] %v6320_v50  ;;  %v5281_v50 = vld [vmem:[%s5526_s11 + $0x18] sm:$0xff]  ;;  %v3145_v6 = vadd.f32 %v3137_v15, %v3097_v24  ;;  %v2044_v15 = vmul.f32 %v6162_v27, %v6308_v45  ;;  %v3090_v27 = vmul.f32 %v6271_v25, %v6245_v32 }
 0x1b6   : > { %5139 = vset.pattern.permute.xlu1 %v7029_v1  ;;  %v3166_v9 = vpop.permute.xlu1 %3165 }
 0x1b7   : > { %v3187_v63 = vmul.f32 %v6322_v19, %v3166_v9  ;;  %3857 = vperm.xlu1 %5139, %v5277_v38   ;;  %v3818_v22 = vpop.permute.xlu0 %3817 }
 0x1b8   : > { %v6328_v23 = vmul.f32 %v6322_v19, %v3818_v22  ;;  %v1804_v22 = vmul.f32 %v5753_v55, %v6249_v20 }
 0x1b9   : > { %v6331_v43 = vadd.f32 %v3187_v63, %v3147_v51  ;;  %v3093_v51 = vmul.f32 %v6238_v42, %v3078_v2 }
 0x1ba   : > { %7030 = vst [vmem:[#allocation81_spill] sm:$0xff] %v6328_v23  ;;  %v1812_v8 = vadd.f32 %v6263_v57, %v1804_v22 }
 0x1bb   : > { %7031 = vst [vmem:[#allocation82_spill] sm:$0xff] %v6331_v43  ;;  %3865 = vperm.xlu1 %5139, %v5281_v50   ;;  %v6335_v34 = vpop.permute.xlu1 %3073  ;;  %v6337_v5 = vpop.f32.mrf.mxu0 }
 0x1bc   : > { %v3185_v38 = vmul.f32 %v6337_v5, %v6206_v41  ;;  %v3814_v9 = vpop.permute.xlu0 %3813  ;;  %v1852_v41 = vmul.f32 %v6043_v12, %v6308_v45 }
 0x1bd   : > { %v6347_v63 = vmul.f32 %v3814_v9, %v6339_v17  ;;  %v6349_v50 = vpop.f32.mrf.mxu0 }
 0x1be   : > { %v3184_v23 = vmul.f32 %v6215_v30, %v6349_v50  ;;  %v6358_v55 = vadd.f32 %v3185_v38, %v3145_v6  ;;  %v3101_v30 = vadd.f32 %v6263_v57, %v3093_v51  ;;  %v2004_v38 = vadd.f32 %v6263_v57, %v1996_v14 }
 0x1bf   : > { %7032 = vst [vmem:[#allocation83_spill] sm:$0xff] %v6347_v63  ;;  %5141 = vset.pattern.permute.xlu1 %v7010_v54  ;;  %v3095_v63 = vmul.f32 %v6247_v37, %v3086_v28  ;;  %v1860_v6 = vadd.f32 %v1852_v41, %v1812_v8 }
 0x1c0   : > { %v3834_v2 = vpop.permute.xlu0 %3833  ;;  %3781 = vperm.xlu1 %5141, %v6291_v11   ;;  %v3126_v24 = vpop.permute.xlu1 %3125  ;;  %v6363_v9 = vadd.f32 %v3184_v23, %v3144_v61  ;;  %v2052_v22 = vadd.f32 %v2044_v15, %v2004_v38  ;;  %v5282_v15 = vld [vmem:[%s5526_s11 + $0x28] sm:$0xff] }
 0x1c1   : > { %v3141_v12 = vmul.f32 %v6300_v0, %v3126_v24  ;;  %v6369_v54 = vpop.f32.mrf.mxu0  ;;  %v3103_v25 = vadd.f32 %v6263_v57, %v3095_v63 }
 0x1c2   : > { %7033 = vst [vmem:[#allocation84_spill] sm:$0xff] %v6363_v9  ;;  %v3189_v23 = vmul.f32 %v6369_v54, %v6226_v21 }
 0x1c3   : > { %v3149_v43 = vadd.f32 %v3141_v12, %v3101_v30  ;;  %v1295_v61 = vpop.f32.mrf.mxu0  ;;  %v3098_v12 = vadd.f32 %v6263_v57, %v3090_v27  ;;  %v1992_v27 = vmul.f32 %v6122_v58, %v6228_v35  ;;  %v2041_v58 = vmul.f32 %v6257_v26, %v6150_v52 }
 0x1c4   : > { %v1900_v51 = vmul.f32 %v5969_v62, %v1295_v61  ;;  %v2092_v28 = vmul.f32 %v6131_v4, %v1295_v61  ;;  %v6379_v24 = vmul.f32 %v6234_v36, %v1295_v61  ;;  %v3822_v9 = vpop.permute.xlu0 %3821  ;;  %5142 = vset.pattern.permute.xlu1 %v7021_v44  ;;  %v3134_v14 = vpop.permute.xlu1 %3133  ;;  %v3138_v4 = vmul.f32 %v6311_v29, %v6297_v18 }
 0x1c5   : > { %v6383_v41 = vmul.f32 %v3822_v9, %v1295_v61  ;;  %v3143_v8 = vmul.f32 %v6303_v48, %v3134_v14  ;;  %v6386_v21 = vpop.f32.mrf.mxu1  ;;  %3825 = vperm.xlu1 %5142, %v5282_v15   ;;  %v6389_v62 = vadd.f32 %v3189_v23, %v3149_v43  ;;  %v1995_v29 = vmul.f32 %v6236_v49, %v6133_v31 }
 0x1c6   : > { %v6394_v36 = vmul.f32 %v6386_v21, %v3834_v2  ;;  %v6396_v30 = vadd.f32 %v2092_v28, %v2052_v22  ;;  %v6400_v9 = vadd.f32 %v1900_v51, %v1860_v6  ;;  %v3146_v43 = vadd.f32 %v3138_v4, %v3098_v12  ;;  %v5283_v51 = vld [vmem:[%s5526_s11 + $0x10] sm:$0xff]  ;;  %v7036_v12 = vld [vmem:[#allocation55_spill] sm:$0xff] }
 0x1c7   : > { %v6398_v63 = vadd.f32 %v3143_v8, %v3103_v25  ;;  %v1993_v2 = vmul.f32 %v6218_v59, %v6076_v40  ;;  %v1994_v6 = vmul.f32 %v6128_v46, %v6245_v32  ;;  %v1805_v22 = vmul.f32 %v6238_v42, %v5982_v39 }
 0x1c8   : > { %7034 = vst [vmem:[#allocation85_spill] sm:$0xff] %v6400_v9  ;;  %v2003_v28 = vadd.f32 %v6263_v57, %v1995_v29  ;;  %v1999_v40 = vmul.f32 %v6247_v37, %v6144_v16  ;;  %v3094_v46 = vmul.f32 %v6196_v33, %v6260_v13  ;;  %v2040_v39 = vmul.f32 %v6097_v47, %v6265_v56  ;;  %v7035_v33 = vld [vmem:[#allocation23_spill] sm:$0xff] }
 0x1c9   : > { %5143 = vset.pattern.permute.xlu1 %v7029_v1  ;;  %v3162_v38 = vpop.permute.xlu1 %3161  ;;  %v2001_v14 = vadd.f32 %v6263_v57, %v1993_v2  ;;  %v2002_v25 = vadd.f32 %v6263_v57, %v1994_v6  ;;  %v2043_v8 = vmul.f32 %v6273_v7, %v6103_v3  ;;  %v2042_v16 = vmul.f32 %v6156_v53, %v6297_v18  ;;  %v7037_v3 = vld [vmem:[#allocation52_spill] sm:$0xff] }
 0x1ca   : > { %v3186_v23 = vmul.f32 %v3162_v38, %v6339_v17  ;;  %3853 = vperm.xlu1 %5143, %v6316_v10   ;;  %v1997_v10 = vmul.f32 %v6238_v42, %v6139_v60  ;;  %v3092_v60 = vmul.f32 %v6335_v34, %v6249_v20  ;;  %v1853_v15 = vmul.f32 %v6300_v0, %v7035_v33  ;;  %v7039_v33 = vld [vmem:[#allocation64_spill] sm:$0xff] }
 0x1cb   : > { %v2000_v4 = vadd.f32 %v6263_v57, %v1992_v27  ;;  %v1813_v52 = vadd.f32 %v6263_v57, %v1805_v22  ;;  %v2089_v34 = vmul.f32 %v6337_v5, %v7036_v12  ;;  %v6447_v38 = vadd.f32 %v6263_v57, %v1999_v40 }
 0x1cc   : > { %v6410_v61 = vadd.f32 %v3186_v23, %v3146_v43  ;;  %v2005_v47 = vadd.f32 %v6263_v57, %v1997_v10  ;;  %v2045_v53 = vmul.f32 %v6300_v0, %v7037_v3  ;;  %v7038_v43 = vld [vmem:[#allocation62_spill] sm:$0xff]  ;;  %v3102_v2 = vadd.f32 %v6263_v57, %v3094_v46  ;;  %v7040_v3 = vld [vmem:[#allocation63_spill] sm:$0xff] }
 0x1cd   : > { %v2088_v23 = vmul.f32 %v7038_v43, %v6349_v50  ;;  %v2049_v6 = vadd.f32 %v2041_v58, %v2001_v14  ;;  %v2048_v27 = vadd.f32 %v2040_v39, %v2000_v4  ;;  %v3100_v22 = vadd.f32 %v6263_v57, %v3092_v60  ;;  %v6463_v43 = vpop.f32.mrf.mxu1  ;;  %v7041_v14 = vld [vmem:[#allocation67_spill] sm:$0xff] }
 0x1ce   : > { %3861 = vperm.xlu1 %5143, %v5283_v51   ;;  %v3206_v31 = vpop.permute.xlu1 %3205  ;;  %v2051_v10 = vadd.f32 %v2043_v8, %v2003_v28  ;;  %v2050_v51 = vadd.f32 %v2042_v16, %v2002_v25  ;;  %v1861_v40 = vadd.f32 %v1853_v15, %v1813_v52  ;;  %v2091_v0 = vmul.f32 %v6322_v19, %v7039_v33  ;;  %v7042_v28 = vld [vmem:[#allocation54_spill] sm:$0xff]  ;;  %v7043_v25 = vld [vmem:[#allocation65_spill] sm:$0xff] }
 0x1cf   : > { %v2097_v39 = vadd.f32 %v2089_v34, %v2049_v6  ;;  %v2047_v60 = vmul.f32 %v6303_v48, %v7042_v28  ;;  %v2093_v8 = vmul.f32 %v6369_v54, %v7043_v25  ;;  %v2096_v4 = vadd.f32 %v2088_v23, %v2048_v27  ;;  %v7046_v33 = vld [vmem:[#allocation58_spill] sm:$0xff] }
 0x1d0   : > { %v2099_v28 = vadd.f32 %v2091_v0, %v2051_v10 }
 0x1d2   : > { %5144 = vset.pattern.permute.xlu1 %v7021_v44 }
 0x1d3   : > { %3829 = vperm.xlu1 %5144, %v6291_v11   ;;  %v3122_v29 = vpop.permute.xlu1 %3121  ;;  %v2090_v11 = vmul.f32 %v7040_v3, %v6339_v17 }
 0x1d4   : > { %v3140_v44 = vmul.f32 %v3122_v29, %v6308_v45  ;;  %v2053_v45 = vadd.f32 %v2045_v53, %v2005_v47  ;;  %v7044_v29 = vld [vmem:[#allocation79_spill] sm:$0xff] }
 0x1d5   : > { %v6459_v12 = vpop.f32.mrf.mxu0  ;;  %v5284_v47 = vld [vmem:[%s5526_s11 + $0x38] sm:$0xff]  ;;  %s5317_s11 = sshll.u32 %s5400_s10, 4  ;;  %s5318_s11 = int_to_ptr.vmem [resolvable:$false] %s5317_s11 }
 0x1d6   : > { %v3148_v46 = vadd.f32 %v3140_v44, %v3100_v22  ;;  %v2137_v58 = vmul.f32 %v6459_v12, %v7041_v14  ;;  %v3233_v52 = vmul.f32 %v6459_v12, %v3206_v31  ;;  %v7045_v44 = vld [vmem:[#allocation57_spill] sm:$0xff]  ;;  %v7048_v31 = vld [vmem:[#allocation46_spill] sm:$0xff]  ;;  %v2101_v0 = vadd.f32 %v2093_v8, %v2053_v45  ;;  %v7055_v45 = vld [vmem:[#allocation59_spill] sm:$0xff]  ;;  %s5319_s4 = scalar_lea.vmem %s5318_s11, 2048  ;;  %p5320_p7 = scmp.lt.s32.totalorder %s6839_s27, %s5318_s11 }
 0x1d7   : > { %5146 = vset.pattern.permute.xlu1 %v7029_v1  ;;  %v3130_v16 = vpop.permute.xlu1 %3129  ;;  %v6472_v15 = vpop.f32.mrf.mxu0  ;;  %v7047_v1 = vld [vmem:[#allocation71_spill] sm:$0xff]  ;;  %v1901_v27 = vmul.f32 %v6369_v54, %v7048_v31  ;;  %p5321_p8 = scmp.lt.s32.totalorder %s5319_s4, %s5313_s9 }
 0x1d8   : > { %v3142_v22 = vmul.f32 %v3130_v16, %v7044_v29  ;;  %v2136_v34 = vmul.f32 %v7045_v44, %v6472_v15  ;;  %3881 = vperm.xlu1 %5146, %v5284_v47   ;;  %v6479_v53 = vpop.f32.mrf.mxu1  ;;  %v2145_v6 = vadd.f32 %v2137_v58, %v2097_v39  ;;  %v6486_v23 = vadd.f32 %v6379_v24, %v3148_v46  ;;  %v7049_v58 = vld [vmem:[#allocation68_spill] sm:$0xff]  ;;  %v3874_v24 = vpop.permute.xlu0 %3873  ;;  %v7051_v46 = vld [vmem:[#allocation66_spill] sm:$0xff]  ;;  %v7052_v31 = vld [vmem:[#allocation75_spill] sm:$0xff] }
 0x1d9   : > { %v2139_v3 = vmul.f32 %v6479_v53, %v7046_v33  ;;  %v3235_v14 = vmul.f32 %v6479_v53, %v7047_v1  ;;  %v2098_v47 = vadd.f32 %v2090_v11, %v2050_v51  ;;  %v7050_v33 = vld [vmem:[#allocation72_spill] sm:$0xff]  ;;  %v2095_v1 = vmul.f32 %v6386_v21, %v7051_v46  ;;  %v7053_v11 = vld [vmem:[#allocation82_spill] sm:$0xff]  ;;  %p5322_p10 = por %p5321_p8, %p5320_p7 }
 0x1da   : > { %v3150_v25 = vadd.f32 %v3142_v22, %v3102_v2  ;;  %v6490_v16 = vpop.f32.mrf.mxu1  ;;  %4910 = vmatprep.subr.mxu0 %v2145_v6  ;;  %v2144_v44 = vadd.f32 %v2136_v34, %v2096_v4  ;;  %v6500_v51 = vadd.f32 %v3233_v52, %v6358_v55  ;;  %v2055_v55 = vadd.f32 %v2047_v60, %v6447_v38  ;;  %v7059_v60 = vld [vmem:[#allocation84_spill] sm:$0xff] }
 0x1db   : > { %v2138_v39 = vmul.f32 %v7049_v58, %v6490_v16  ;;  %v3234_v9 = vmul.f32 %v7050_v33, %v6490_v16  ;;  %4911 = vmatpush3.msra.mxu0 %v2145_v6  ;;  %v2147_v10 = vadd.f32 %v2139_v3, %v2099_v28  ;;  %v6503_v4 = vadd.f32 %v3235_v14, %v7053_v11  ;;  %v7054_v6 = vld [vmem:[#allocation42_spill] sm:$0xff]  ;;  %p5323_p0 = pnand %p5322_p10, %p5316_p5 }
 0x1dc   : > { %3869 = vperm.xlu1 %5146, %v7052_v31   ;;  %v3182_v2 = vpop.permute.xlu1 %3181  ;;  %v4902_v22 = vpop.f32.mrf.mxu0  ;;  %4912 = vmatprep.subr.mxu0 %v2144_v44  ;;  %v1909_v33 = vadd.f32 %v1901_v27, %v1861_v40 }
 0x1dd   : > { %v3191_v34 = vmul.f32 %v6386_v21, %v3182_v2  ;;  %v1949_v3 = vmul.f32 %v4902_v22, %v7054_v6  ;;  %v2141_v8 = vmul.f32 %v4902_v22, %v7055_v45  ;;  %4913 = vmatpush3.msra.mxu0 %v2144_v44  ;;  %4917 = vmatprep.subr.mxu1 %v2147_v10  ;;  %v7057_v44 = vld [vmem:[#allocation60_spill] sm:$0xff] }
 0x1de   : > { %4918 = vmatpush3.msra.mxu1 %v2147_v10  ;;  %v2146_v28 = vadd.f32 %v2138_v39, %v2098_v47  ;;  %v6508_v58 = vmul.f32 %v4902_v22, %v3874_v24  ;;  %v6511_v46 = vadd.f32 %v3234_v9, %v6410_v61  ;;  %v7058_v39 = vld [vmem:[#allocation73_spill] sm:$0xff]  ;;  %v2103_v61 = vadd.f32 %v2095_v1, %v2055_v55  ;;  %v7061_v6 = vld [vmem:[#allocation76_spill] sm:$0xff] }
 0x1df   : > { %v3199_v52 = vadd.f32 %v3191_v34, %v6398_v63  ;;  %v6515_v14 = vadd.f32 %v2141_v8, %v2101_v0  ;;  %v6519_v2 = vadd.f32 %v1949_v3, %v1909_v33  ;;  %v7062_v8 = vld [vmem:[#allocation74_spill] sm:$0xff] }
 0x1e0   : > { %7056 = vst [vmem:[#allocation23_spill] sm:$0xff] %v6511_v46  ;;  %4919 = vmatprep.subr.mxu1 %v2146_v28  ;;  %v6517_v31 = vpop.f32.mrf.mxu1  ;;  %v7087_v46 = vld [vmem:[#allocation25_spill] sm:$0xff] }
 0x1e1   : > { %v2143_v47 = vmul.f32 %v6517_v31, %v7057_v44  ;;  %v3239_v40 = vmul.f32 %v6517_v31, %v7058_v39  ;;  %4920 = vmatpush3.msra.mxu1 %v2146_v28  ;;  %v3202_v9 = vpop.permute.xlu1 %3201  ;;  %4924 = vmatprep.subr.mxu0 %v6515_v14 }
 0x1e2   : > { %v3232_v63 = vmul.f32 %v3202_v9, %v6472_v15  ;;  %v6538_v1 = vpop.f32.mrf.mxu1 }
 0x1e3   : > { %v6527_v38 = vadd.f32 %v2143_v47, %v2103_v61  ;;  %v6532_v10 = vadd.f32 %v3239_v40, %v3199_v52  ;;  %v3238_v28 = vmul.f32 %v7062_v8, %v6538_v1  ;;  %v7066_v8 = vld [vmem:[#allocation13_spill] sm:$0xff] }
 0x1e4   : > { %v6530_v27 = vadd.f32 %v3232_v63, %v7059_v60  ;;  %v7065_v60 = vld [vmem:[#allocation77_spill] sm:$0xff] }
 0x1e5   : > { %7060 = vst [vmem:[#allocation55_spill] sm:$0xff] %v6532_v10  ;;  %4931 = vmatprep.subr.mxu1 %v6527_v38  ;;  %v7082_v10 = vld [vmem:[#allocation19_spill] sm:$0xff] }
 0x1e6   : > { %v3714_v0 = vpop.permute.xlu1 %3713 }
 0x1e7   : > { %v3741_v24 = vmul.f32 %v6218_v59, %v3714_v0 }
 0x1e9   : > { %v3749_v11 = vadd.f32 %v6263_v57, %v3741_v24  ;;  %v6551_v24 = vpop.permute.xlu0 %3877 }
 0x1ea   : > { %v3722_v34 = vpop.permute.xlu1 %3721 }
 0x1eb   : > { %v3797_v3 = vadd.f32 %v7061_v6, %v3749_v11  ;;  %v3743_v11 = vmul.f32 %v6236_v49, %v3722_v34 }
 0x1ed   : > { %v6554_v6 = vpop.trf.xlu0 }
 0x1ef   : > { %v3178_v45 = vpop.permute.xlu1 %3177 }
 0x1f0   : > { %v3190_v33 = vmul.f32 %v3178_v45, %v6463_v43 }
 0x1f2   : > { %v3198_v55 = vadd.f32 %v3190_v33, %v3150_v25 }
 0x1f4   : > { %v3222_v52 = vpop.permute.xlu1 %3221  ;;  %v6543_v44 = vadd.f32 %v3238_v28, %v3198_v55  ;;  %v7067_v28 = vld [vmem:[#allocation15_spill] sm:$0xff]  ;;  %v6561_v55 = vpop.trf.xlu0 }
 0x1f5   : > { %v3237_v47 = vmul.f32 %v4902_v22, %v3222_v52  ;;  %v3751_v22 = vadd.f32 %v6263_v57, %v3743_v11  ;;  %v7068_v33 = vpack.i.bf16 %v7066_v8, %v7067_v28  ;;  %v6563_v52 = vpop.f32.mrf.mxu0  ;;  %v7075_v28 = vld [vmem:[#allocation11_spill] sm:$0xff] }
 0x1f6   : > { %7063 = vst [vmem:[#allocation52_spill] sm:$0xff] %v6543_v44 }
 0x1f7   : > { %v6546_v39 = vadd.f32 %v3237_v47, %v6389_v62 }
 0x1f9   : > { %7064 = vst [vmem:[#allocation62_spill] sm:$0xff] %v6546_v39  ;;  %v3710_v40 = vpop.permute.xlu1 %3709  ;;  %v7086_v39 = vld [vmem:[#allocation21_spill] sm:$0xff] }
 0x1fa   : > { %v3740_v9 = vmul.f32 %v3710_v40, %v6228_v35  ;;  %v7069_v40 = vld [vmem:[#allocation81_spill] sm:$0xff] }
 0x1fc   : > { %v3748_v61 = vadd.f32 %v6263_v57, %v3740_v9 }
 0x1fd   : > { %v3718_v63 = vpop.permute.xlu1 %3717 }
 0x1fe   : > { %v3796_v0 = vadd.f32 %v7065_v60, %v3748_v61  ;;  %v7071_v61 = vld [vmem:[#allocation17_spill] sm:$0xff]  ;;  %v7072_v60 = vld [vmem:[#allocation16_spill] sm:$0xff] }
 0x1ff   : > { %v7073_v11 = vpack.i.bf16 %v7071_v61, %v7072_v60  ;;  %v7079_v61 = vld [vmem:[#allocation8_spill] sm:$0xff] }
 0x202   : > { %v3770_v25 = vpop.permute.xlu1 %3769 }
 0x203   : > { %v3791_v62 = vmul.f32 %v6273_v7, %v3770_v25 }
 0x205   : > { %v3799_v45 = vadd.f32 %v3791_v62, %v3751_v22  ;;  %5148 = vxpose.xlu1.b32.start [1/2] (short) (narrow) %v7068_v33, 16  ;;  %v6575_v22 = vpop.trf.xlu0  ;;  %v7076_v33 = vld [vmem:[#allocation9_spill] sm:$0xff] }
 0x206   : > { %v7077_v44 = vpack.i.bf16 %v7075_v28, %v7076_v33 }
 0x207   : > { %v3218_v47 = vpop.permute.xlu1 %3217  ;;  %v6566_v9 = vadd.f32 %v7069_v40, %v3799_v45 }
 0x208   : > { %v3236_v34 = vmul.f32 %v3218_v47, %v6563_v52 }
 0x209   : > { %7070 = vst [vmem:[#allocation64_spill] sm:$0xff] %v6566_v9  ;;  %5150 = vxpose.xlu1.b32.end [2/2] (short) (narrow) %v7073_v11, 16  ;;  %v6582_v40 = vpop.trf.xlu0  ;;  %v7078_v9 = vld [vmem:[#allocation10_spill] sm:$0xff]  ;;  %v3742_v11 = vmul.f32 %v3718_v63, %v6245_v32 }
 0x20a   : > { %v6573_v25 = vadd.f32 %v3236_v34, %v6486_v23  ;;  %v7080_v60 = vpack.i.bf16 %v7078_v9, %v7079_v61  ;;  %v7081_v23 = vld [vmem:[#allocation78_spill] sm:$0xff]  ;;  %v7088_v9 = vpack.i.bf16 %v7086_v39, %v7087_v46 }
 0x20c   : > { %7074 = vst [vmem:[#allocation63_spill] sm:$0xff] %v6573_v25  ;;  %v3730_v62 = vpop.permute.xlu1 %3729 }
 0x20d   : > { %v3745_v8 = vmul.f32 %v6238_v42, %v3730_v62  ;;  %5162 = vxpose.xlu1.b32.start [1/2] (short) (narrow) %v7077_v44, 16  ;;  %v7083_v42 = vld [vmem:[#allocation18_spill] sm:$0xff]  ;;  %v6592_v28 = vpop.trf.xlu0  ;;  %v3750_v44 = vadd.f32 %v6263_v57, %v3742_v11 }
 0x20e   : > { %v7084_v62 = vpack.i.bf16 %v7082_v10, %v7083_v42  ;;  %7085 = vst [vmem:[#allocation67_spill] sm:$0xff] %v6592_v28  ;;  %v7091_v42 = vld [vmem:[#allocation27_spill] sm:$0xff] }
 0x20f   : > { %v3753_v45 = vadd.f32 %v6263_v57, %v3745_v8 }
 0x210   : > { %v3738_v47 = vpop.permute.xlu1 %3737 }
 0x211   : > { %5164 = vxpose.xlu1.b32.end [2/2] (short) (narrow) %v7080_v60, 16  ;;  %v3801_v34 = vadd.f32 %v7081_v23, %v3753_v45  ;;  %v7089_v45 = vld [vmem:[#allocation83_spill] sm:$0xff]  ;;  %v6603_v23 = vpop.trf.xlu0 }
 0x215   : > { %v3766_v25 = vpop.permute.xlu1 %3765  ;;  %5204 = vxpose.xlu1.b32.start [1/2] (short) (narrow) %v7084_v62, 16  ;;  %v7092_v62 = vld [vmem:[#allocation26_spill] sm:$0xff]  ;;  %v6612_v39 = vpop.trf.xlu0 }
 0x216   : > { %v3790_v8 = vmul.f32 %v3766_v25, %v6297_v18  ;;  %v7093_v28 = vpack.i.bf16 %v7091_v42, %v7092_v62 }
 0x218   : > { %v3798_v33 = vadd.f32 %v3790_v8, %v3750_v44  ;;  %v7094_v44 = vld [vmem:[#allocation37_spill] sm:$0xff]  ;;  %v7095_v8 = vld [vmem:[#allocation35_spill] sm:$0xff] }
 0x219   : > { %5206 = vxpose.xlu1.b32.end [2/2] (short) (narrow) %v7088_v9, 16  ;;  %v7096_v46 = vpack.i.bf16 %v7094_v44, %v7095_v8 }
 0x21a   : > { %v3810_v61 = vpop.permute.xlu1 %3809  ;;  %v6600_v60 = vadd.f32 %v7089_v45, %v3798_v33 }
 0x21b   : > { %v3837_v63 = vmul.f32 %v6337_v5, %v3810_v61  ;;  %v7097_v61 = vld [vmem:[#allocation80_spill] sm:$0xff] }
 0x21c   : > { %7090 = vst [vmem:[#allocation54_spill] sm:$0xff] %v6600_v60 }
 0x21d   : > { %v3845_v10 = vadd.f32 %v3837_v63, %v3797_v3  ;;  %5246 = vxpose.xlu1.b32.start [1/2] (short) (narrow) %v7093_v28, 16  ;;  %v3747_v3 = vmul.f32 %v6247_v37, %v3738_v47  ;;  %v6620_v28 = vpop.trf.xlu0 }
 0x21e   : > { %7099 = vst [vmem:[#allocation79_spill] sm:$0xff] %v6620_v28 }
 0x21f   : > { %v3726_v11 = vpop.permute.xlu1 %3725 }
 0x220   : > { %v3744_v25 = vmul.f32 %v3726_v11, %v6249_v20  ;;  %v3755_v20 = vadd.f32 %v6263_v57, %v3747_v3 }
 0x221   : > { %5248 = vxpose.xlu1.b32.end [2/2] (short) (narrow) %v7096_v46, 16 }
 0x222   : > { %v3752_v33 = vadd.f32 %v6263_v57, %v3744_v25 }
 0x223   : > { %v3734_v9 = vpop.permute.xlu1 %3733 }
 0x224   : > { %v3800_v45 = vadd.f32 %v7097_v61, %v3752_v33 }
 0x226   : > { %v6618_v63 = vadd.f32 %v6383_v41, %v3800_v45  ;;  %v3746_v45 = vmul.f32 %v3734_v9, %v6260_v13 }
 0x228   : > { %7098 = vst [vmem:[#allocation65_spill] sm:$0xff] %v6618_v63  ;;  %v3786_v42 = vpop.permute.xlu1 %3785  ;;  %v7107_v63 = vld [vmem:[#allocation33_spill] sm:$0xff] }
 0x229   : > { %v3795_v62 = vmul.f32 %v6303_v48, %v3786_v42  ;;  %v3754_v42 = vadd.f32 %v6263_v57, %v3746_v45 }
 0x22b   : > { %v3803_v11 = vadd.f32 %v3795_v62, %v3755_v20 }
 0x22d   : > { %v3806_v44 = vpop.permute.xlu1 %3805  ;;  %v6625_v8 = vadd.f32 %v6394_v36, %v3803_v11 }
 0x22e   : > { %v3836_v25 = vmul.f32 %v3806_v44, %v6349_v50 }
 0x22f   : > { %7100 = vst [vmem:[#allocation57_spill] sm:$0xff] %v6625_v8 }
 0x230   : > { %v6628_v46 = vadd.f32 %v3836_v25, %v3796_v0 }
 0x232   : > { %v3858_v47 = vpop.permute.xlu1 %3857 }
 0x233   : > { %v3885_v41 = vmul.f32 %v6459_v12, %v3858_v47 }
 0x235   : > { %v6631_v33 = vadd.f32 %v3885_v41, %v3845_v10  ;;  %v3890_v41 = vmul.f32 %v6551_v24, %v6538_v1  ;;  %v1807_v24 = vmul.f32 %v6247_v37, %v7107_v63 }
 0x236   : > { %v6633_v61 = vpop.permute.xlu1 %3865 }
 0x23b   : > { %v3782_v3 = vpop.permute.xlu1 %3781 }
 0x23c   : > { %v3794_v20 = vmul.f32 %v3782_v3, %v7044_v29 }
 0x23e   : > { %v3802_v36 = vadd.f32 %v3794_v20, %v3754_v42 }
 0x240   : > { %v3826_v62 = vpop.permute.xlu1 %3825 }
 0x241   : > { %v3841_v11 = vmul.f32 %v6369_v54, %v3826_v62  ;;  %v7103_v54 = vld [vmem:[#allocation31_spill] sm:$0xff]  ;;  %v7105_v62 = vld [vmem:[#allocation28_spill] sm:$0xff] }
 0x243   : > { %v3849_v0 = vadd.f32 %v3841_v11, %v3801_v34  ;;  %v1803_v34 = vmul.f32 %v6236_v49, %v7103_v54  ;;  %v1800_v11 = vmul.f32 %v7105_v62, %v6228_v35  ;;  %v7110_v54 = vld [vmem:[#allocation34_spill] sm:$0xff]  ;;  %v7111_v35 = vld [vmem:[#allocation20_spill] sm:$0xff] }
 0x245   : > { %v6640_v44 = vadd.f32 %v6508_v58, %v3849_v0  ;;  %v6642_v25 = vpop.permute.xlu1 %3853  ;;  %v7104_v58 = vld [vmem:[#allocation12_spill] sm:$0xff]  ;;  %v7106_v0 = vld [vmem:[#allocation30_spill] sm:$0xff]  ;;  %v1808_v37 = vadd.f32 %v6263_v57, %v1800_v11 }
 0x246   : > { %v1801_v20 = vmul.f32 %v6218_v59, %v7104_v58  ;;  %v1849_v59 = vmul.f32 %v6257_v26, %v7110_v54  ;;  %v1848_v58 = vmul.f32 %v7111_v35, %v6265_v56  ;;  %v7115_v54 = vld [vmem:[#allocation36_spill] sm:$0xff] }
 0x247   : > { %7101 = vst [vmem:[#allocation58_spill] sm:$0xff] %v6640_v44  ;;  %v1850_v56 = vmul.f32 %v7115_v54, %v6297_v18  ;;  %v7116_v35 = vld [vmem:[#allocation56_spill] sm:$0xff]  ;;  %v7120_v54 = vld [vmem:[#allocation45_spill] sm:$0xff] }
 0x248   : > { %v1809_v49 = vadd.f32 %v6263_v57, %v1801_v20  ;;  %v7114_v20 = vld [vmem:[#allocation14_spill] sm:$0xff]  ;;  %v1856_v28 = vadd.f32 %v1848_v58, %v1808_v37 }
 0x249   : > { %v6644_v10 = vpop.permute.xlu1 %3861 }
 0x24e   : > { %v3830_v47 = vpop.permute.xlu1 %3829 }
 0x24f   : > { %v3842_v9 = vmul.f32 %v3830_v47, %v6463_v43  ;;  %v1802_v47 = vmul.f32 %v7106_v0, %v6245_v32  ;;  %v7112_v32 = vld [vmem:[#allocation61_spill] sm:$0xff]  ;;  %v1815_v0 = vadd.f32 %v6263_v57, %v1807_v24  ;;  %v7117_v24 = vld [vmem:[#allocation24_spill] sm:$0xff] }
 0x250   : > { %v2046_v62 = vmul.f32 %v7112_v32, %v7044_v29  ;;  %v2094_v32 = vmul.f32 %v7116_v35, %v6463_v43  ;;  %v7123_v35 = vld [vmem:[#allocation49_spill] sm:$0xff] }
 0x251   : > { %v3850_v45 = vadd.f32 %v3842_v9, %v3802_v36  ;;  %v7108_v36 = vld [vmem:[#allocation48_spill] sm:$0xff]  ;;  %v1810_v63 = vadd.f32 %v6263_v57, %v1802_v47  ;;  %v1857_v47 = vadd.f32 %v1849_v59, %v1809_v49  ;;  %v7121_v49 = vld [vmem:[#allocation29_spill] sm:$0xff] }
 0x252   : > { %v1998_v9 = vmul.f32 %v7108_v36, %v6260_v13  ;;  %v7113_v36 = vld [vmem:[#allocation22_spill] sm:$0xff]  ;;  %v1897_v59 = vmul.f32 %v6337_v5, %v7121_v49 }
 0x253   : > { %v6649_v3 = vadd.f32 %v3890_v41, %v3850_v45  ;;  %v6651_v42 = vpop.permute.xlu1 %3881  ;;  %v1811_v45 = vadd.f32 %v6263_v57, %v1803_v34  ;;  %v1851_v34 = vmul.f32 %v6273_v7, %v7113_v36  ;;  %v1858_v18 = vadd.f32 %v1850_v56, %v1810_v63  ;;  %v7125_v56 = vld [vmem:[#allocation41_spill] sm:$0xff] }
 0x254   : > { %v2006_v26 = vadd.f32 %v6263_v57, %v1998_v9  ;;  %v7119_v9 = vld [vmem:[#allocation70_spill] sm:$0xff] }
 0x255   : > { %7102 = vst [vmem:[#allocation71_spill] sm:$0xff] %v6649_v3  ;;  %v1806_v3 = vmul.f32 %v7114_v20, %v6260_v13  ;;  %v1859_v36 = vadd.f32 %v1851_v34, %v1811_v45  ;;  %v7118_v13 = vld [vmem:[#allocation69_spill] sm:$0xff]  ;;  %v2142_v60 = vmul.f32 %v7119_v9, %v6538_v1  ;;  %v7122_v34 = vld [vmem:[#allocation43_spill] sm:$0xff] }
 0x256   : > { %v2054_v7 = vadd.f32 %v2046_v62, %v2006_v26  ;;  %v2140_v20 = vmul.f32 %v7118_v13, %v6563_v52  ;;  %v1898_v26 = vmul.f32 %v7122_v34, %v6339_v17  ;;  %v5180_v17 = vunpack.i.l.bf16 %v6554_v6  ;;  %v7127_v13 = vld [vmem:[#allocation38_spill] sm:$0xff] }
 0x257   : > { %v6665_v41 = vpop.permute.xlu1 %3869  ;;  %v1944_v9 = vmul.f32 %v7127_v13, %v6472_v15  ;;  %v7137_v13 = vld [vmem:[#allocation55_spill] sm:$0xff] }
 0x258   : > { %7109 = vst [vmem:[#allocation46_spill] sm:$0xff] %v6665_v41  ;;  %v1855_v41 = vmul.f32 %v6303_v48, %v7117_v24  ;;  %v2102_v58 = vadd.f32 %v2094_v32, %v2054_v7  ;;  %v7124_v24 = vld [vmem:[#allocation40_spill] sm:$0xff]  ;;  %v2148_v5 = vadd.f32 %v2140_v20, %v6396_v30  ;;  %v7128_v30 = vld [vmem:[#allocation50_spill] sm:$0xff]  ;;  %v7129_v20 = vld [vmem:[#allocation39_spill] sm:$0xff] }
 0x259   : > { %v1947_v63 = vmul.f32 %v6479_v53, %v7124_v24 }
 0x25a   : > { %v1863_v37 = vadd.f32 %v1855_v41, %v1815_v0  ;;  %v2150_v32 = vadd.f32 %v2142_v60, %v2102_v58  ;;  %v5183_v41 = vunpack.i.h.bf16 %v6554_v6  ;;  %v1905_v0 = vadd.f32 %v1897_v59, %v1857_v47 }
 0x25b   : > { %v1946_v60 = vmul.f32 %v7128_v30, %v6490_v16  ;;  %v5188_v6 = vunpack.i.h.bf16 %v6561_v55  ;;  %v5185_v47 = vunpack.i.l.bf16 %v6561_v55  ;;  %v5197_v59 = vunpack.i.h.bf16 %v6575_v22 }
 0x25c   : > { %v1906_v58 = vadd.f32 %v1898_v26, %v1858_v18  ;;  %v5199_v18 = vunpack.i.l.bf16 %v6582_v40 }
 0x281   : > { %v5151_v44 = vpop.trf.xlu1 }
 0x282   : > { %v5155_v11 = vunpack.i.h.bf16 %v5151_v44  ;;  %v5152_v8 = vunpack.i.l.bf16 %v5151_v44  ;;  %v1899_v44 = vmul.f32 %v6322_v19, %v7120_v54  ;;  %v1896_v19 = vmul.f32 %v7125_v56, %v6349_v50  ;;  %v7126_v50 = vld [vmem:[#allocation47_spill] sm:$0xff] }
 0x283   : > { %v1903_v7 = vmul.f32 %v6386_v21, %v7126_v50  ;;  %v5194_v21 = vunpack.i.l.bf16 %v6575_v22  ;;  %v1854_v54 = vmul.f32 %v7129_v20, %v7044_v29  ;;  %v1954_v29 = vadd.f32 %v1946_v60, %v1906_v58  ;;  %v7132_v22 = vld [vmem:[#allocation51_spill] sm:$0xff]  ;;  %v7143_v20 = vld [vmem:[#allocation46_spill] sm:$0xff] }
 0x284   : > { %4914 = vmatprep.mubr.msk.f32.mxu0 %vm316_vm0, %v5152_v8  ;;  %4921 = vmatprep.mubr.msk.f32.mxu1 %vm316_vm0, %v5155_v11  ;;  %v1945_v8 = vmul.f32 %v6459_v12, %v7123_v35  ;;  %v1907_v11 = vadd.f32 %v1899_v44, %v1859_v36  ;;  %v1904_v36 = vadd.f32 %v1896_v19, %v1856_v28  ;;  %v7130_v44 = vld [vmem:[#allocation44_spill] sm:$0xff]  ;;  %v7135_v50 = vld [vmem:[#allocation23_spill] sm:$0xff] }
 0x285   : > { %v5156_v48 = vpop.trf.xlu1  ;;  %v1951_v49 = vmul.f32 %v6517_v31, %v7130_v44  ;;  %v7131_v28 = vld [vmem:[#allocation32_spill] sm:$0xff]  ;;  %v1911_v34 = vadd.f32 %v1903_v7, %v1863_v37  ;;  %v1948_v35 = vmul.f32 %v7132_v22, %v6563_v52 }
 0x286   : > { %v5160_v45 = vunpack.i.h.bf16 %v5156_v48  ;;  %v5157_v62 = vunpack.i.l.bf16 %v5156_v48  ;;  %v1952_v55 = vadd.f32 %v1944_v9, %v1904_v36  ;;  %v7138_v9 = vld [vmem:[#allocation67_spill] sm:$0xff]  ;;  %v5236_v36 = vunpack.i.l.bf16 %v6612_v39 }
 0x287   : > { %v5222_v30 = vunpack.i.l.bf16 %v7138_v9  ;;  %v5225_v60 = vunpack.i.h.bf16 %v7138_v9 }
 0x288   : > { %4915 = vmatmul.mubr.msk.f32.vlgmr.msra.gmra.mxu0 %vm316_vm0, %v5157_v62  ;;  %4922 = vmatmul.mubr.msk.f32.vlgmr.msra.gmra.mxu1 %vm316_vm0, %v5160_v45  ;;  %v1814_v45 = vadd.f32 %v6263_v57, %v1806_v3  ;;  %v1902_v62 = vmul.f32 %v7131_v28, %v6463_v43  ;;  %v7133_v3 = vld [vmem:[#allocation53_spill] sm:$0xff]  ;;  %v1959_v43 = vadd.f32 %v1951_v49, %v1911_v34  ;;  %v7146_v49 = vld [vmem:[#allocation58_spill] sm:$0xff]  ;;  %v5399_v28 = vmov 32  }
 0x289   : > { %4925 = vmatpush3.msra.mxu0 %v6515_v14  ;;  %4932 = vmatpush3.msra.mxu1 %v6527_v38  ;;  %v6714_v12 = vpop.trf.xlu1  ;;  %v1953_v14 = vadd.f32 %v1945_v8, %v1905_v0  ;;  %v1955_v38 = vadd.f32 %v1947_v63, %v1907_v11  ;;  %v5202_v8 = vunpack.i.h.bf16 %v6582_v40  ;;  %v1950_v26 = vmul.f32 %v7133_v3, %v6538_v1  ;;  %v7134_v63 = vld [vmem:[#allocation85_spill] sm:$0xff] }
 0x28a   : > { %4926 = vmatprep.subr.mxu0 %v2148_v5  ;;  %4933 = vmatprep.subr.mxu1 %v2150_v32  ;;  %v1862_v57 = vadd.f32 %v1854_v54, %v1814_v45  ;;  %v5166_v40 = vunpack.i.l.bf16 %v6714_v12  ;;  %v1956_v56 = vadd.f32 %v1948_v35, %v7134_v63  ;;  %v5169_v1 = vunpack.i.h.bf16 %v6714_v12 }
 0x28b   : > { %4928 = vmatprep.mubr.msk.f32.mxu0 %vm316_vm0, %v5180_v17  ;;  %4935 = vmatprep.mubr.msk.f32.mxu1 %vm316_vm0, %v5183_v41  ;;  %v3888_v54 = vmul.f32 %v7143_v20, %v6563_v52  ;;  %v7147_v52 = vld [vmem:[#allocation65_spill] sm:$0xff] }
 0x28c   : > { %4927 = vmatpush3.msra.mxu0 %v2148_v5  ;;  %4934 = vmatpush3.msra.mxu1 %v2150_v32  ;;  %v1910_v37 = vadd.f32 %v1902_v62, %v1862_v57 }
 0x28d   : > { %4938 = vmatprep.subr.mxu0 %v1953_v14  ;;  %4945 = vmatprep.subr.mxu1 %v1955_v38  ;;  %v5170_v48 = vpop.trf.xlu1 }
 0x28e   : > { %4929 = vmatmul.mubr.msk.f32.vlgmr.msra.gmra.mxu0 %vm316_vm0, %v5185_v47  ;;  %4936 = vmatmul.mubr.msk.f32.vlgmr.msra.gmra.mxu1 %vm316_vm0, %v5188_v6  ;;  %v1958_v19 = vadd.f32 %v1950_v26, %v1910_v37  ;;  %v5174_v32 = vunpack.i.h.bf16 %v5170_v48  ;;  %v5171_v41 = vunpack.i.l.bf16 %v5170_v48  ;;  %v7141_v6 = vld [vmem:[#allocation52_spill] sm:$0xff]  ;;  %v5230_v47 = vunpack.i.h.bf16 %v6603_v23 }
 0x28f   : > { %4939 = vmatpush3.msra.mxu0 %v1953_v14  ;;  %4946 = vmatpush3.msra.mxu1 %v1955_v38  ;;  %v3886_v38 = vmul.f32 %v6644_v10, %v6490_v16 }
 0x290   : > { %4940 = vmatprep.subr.mxu0 %v1952_v55  ;;  %4942 = vmatprep.mubr.msk.f32.mxu0 %vm316_vm0, %v5194_v21  ;;  %v5227_v21 = vunpack.i.l.bf16 %v6603_v23  ;;  %v7142_v23 = vld [vmem:[#allocation54_spill] sm:$0xff] }
 0x291   : > { %4947 = vmatprep.subr.mxu1 %v1954_v29  ;;  %4949 = vmatprep.mubr.msk.f32.mxu1 %vm316_vm0, %v5197_v59  ;;  %v5207_v24 = vpop.trf.xlu1  ;;  %v3894_v10 = vadd.f32 %v3886_v38, %v7142_v23  ;;  %v3896_v59 = vadd.f32 %v3888_v54, %v7147_v52 }
 0x292   : > { %4941 = vmatpush3.msra.mxu0 %v1952_v55  ;;  %4948 = vmatpush3.msra.mxu1 %v1954_v29  ;;  %v5208_v17 = vunpack.i.l.bf16 %v5207_v24  ;;  %v5211_v0 = vunpack.i.h.bf16 %v5207_v24  ;;  %v7148_v55 = vld [vmem:[#allocation71_spill] sm:$0xff] }
 0x293   : > { %4952 = vmatprep.subr.mxu0 %v6519_v2  ;;  %4959 = vmatprep.subr.mxu1 %v1959_v43 }
 0x294   : > { %4943 = vmatmul.mubr.msk.f32.vlgmr.msra.gmra.mxu0 %vm316_vm0, %v5199_v18  ;;  %4950 = vmatmul.mubr.msk.f32.vlgmr.msra.gmra.mxu1 %vm316_vm0, %v5202_v8 }
 0x295   : > { %4953 = vmatpush3.msra.mxu0 %v6519_v2  ;;  %4960 = vmatpush3.msra.mxu1 %v1959_v43  ;;  %v5212_v5 = vpop.trf.xlu1 }
 0x296   : > { %4954 = vmatprep.subr.mxu0 %v1956_v56  ;;  %4956 = vmatprep.mubr.msk.f32.mxu0 %vm316_vm0, %v5166_v40  ;;  %v5216_v12 = vunpack.i.h.bf16 %v5212_v5  ;;  %v5213_v11 = vunpack.i.l.bf16 %v5212_v5 }
 0x297   : > { %4961 = vmatprep.subr.mxu1 %v1958_v19  ;;  %4963 = vmatprep.mubr.msk.f32.mxu1 %vm316_vm0, %v5169_v1 }
 0x298   : > { %4955 = vmatpush3.msra.mxu0 %v1956_v56  ;;  %4962 = vmatpush3.msra.mxu1 %v1958_v19 }
 0x299   : > { %4966 = vmatprep.subr.mxu0 %v6500_v51  ;;  %4973 = vmatprep.subr.mxu1 %v6503_v4  ;;  %v6756_v2 = vpop.trf.xlu1 }
 0x29a   : > { %4957 = vmatmul.mubr.msk.f32.vlgmr.msra.gmra.mxu0 %vm316_vm0, %v5171_v41  ;;  %4964 = vmatmul.mubr.msk.f32.vlgmr.msra.gmra.mxu1 %vm316_vm0, %v5174_v32  ;;  %v5253_v48 = vunpack.i.h.bf16 %v6756_v2 }
 0x29b   : > { %4967 = vmatpush3.msra.mxu0 %v6500_v51  ;;  %4974 = vmatpush3.msra.mxu1 %v6503_v4  ;;  %v3887_v51 = vmul.f32 %v6479_v53, %v6633_v61  ;;  %v7136_v4 = vld [vmem:[#allocation62_spill] sm:$0xff]  ;;  %v7139_v53 = vld [vmem:[#allocation63_spill] sm:$0xff]  ;;  %v7140_v61 = vld [vmem:[#allocation64_spill] sm:$0xff] }
 0x29c   : > { %4968 = vmatprep.subr.mxu0 %v6530_v27  ;;  %4970 = vmatprep.mubr.msk.f32.mxu0 %vm316_vm0, %v5208_v17 }
 0x29d   : > { %4975 = vmatprep.subr.mxu1 %v7135_v50  ;;  %4977 = vmatprep.mubr.msk.f32.mxu1 %vm316_vm0, %v5211_v0  ;;  %v6766_v7 = vpop.trf.xlu1  ;;  %v3895_v14 = vadd.f32 %v3887_v51, %v7140_v61 }
 0x29e   : > { %4969 = vmatpush3.msra.mxu0 %v6530_v27  ;;  %4976 = vmatpush3.msra.mxu1 %v7135_v50  ;;  %v3884_v27 = vmul.f32 %v6642_v25, %v6472_v15  ;;  %v3891_v15 = vmul.f32 %v6517_v31, %v6651_v42  ;;  %v5239_v25 = vunpack.i.h.bf16 %v6612_v39  ;;  %v7144_v31 = vld [vmem:[#allocation79_spill] sm:$0xff]  ;;  %v5258_v58 = vunpack.i.h.bf16 %v6766_v7 }
 0x29f   : > { %4980 = vmatprep.subr.mxu0 %v7136_v4  ;;  %4987 = vmatprep.subr.mxu1 %v7137_v13  ;;  %v5244_v42 = vunpack.i.h.bf16 %v7144_v31  ;;  %v5241_v39 = vunpack.i.l.bf16 %v7144_v31  ;;  %v5255_v45 = vunpack.i.l.bf16 %v6766_v7 }
 0x2a0   : > { %4971 = vmatmul.mubr.msk.f32.vlgmr.msra.gmra.mxu0 %vm316_vm0, %v5213_v11  ;;  %4978 = vmatmul.mubr.msk.f32.vlgmr.msra.gmra.mxu1 %vm316_vm0, %v5216_v12  ;;  %v3892_v16 = vadd.f32 %v3884_v27, %v6628_v46  ;;  %v7145_v46 = vld [vmem:[#allocation57_spill] sm:$0xff] }
 0x2a1   : > { %4981 = vmatpush3.msra.mxu0 %v7136_v4  ;;  %4988 = vmatpush3.msra.mxu1 %v7137_v13  ;;  %v3899_v44 = vadd.f32 %v3891_v15, %v7145_v46 }
 0x2a2   : > { %4982 = vmatprep.subr.mxu0 %v7139_v53  ;;  %4984 = vmatprep.mubr.msk.f32.mxu0 %vm316_vm0, %v5222_v30 }
 0x2a3   : > { %4989 = vmatprep.subr.mxu1 %v7141_v6  ;;  %4991 = vmatprep.mubr.msk.f32.mxu1 %vm316_vm0, %v5225_v60 }
 0x2a4   : > { %4983 = vmatpush3.msra.mxu0 %v7139_v53  ;;  %4990 = vmatpush3.msra.mxu1 %v7141_v6 }
 0x2a5   : > { %4994 = vmatprep.subr.mxu0 %v6631_v33  ;;  %5001 = vmatprep.subr.mxu1 %v3895_v14 }
 0x2a6   : > { %4985 = vmatmul.mubr.msk.f32.vlgmr.msra.gmra.mxu0 %vm316_vm0, %v5227_v21  ;;  %4992 = vmatmul.mubr.msk.f32.vlgmr.msra.gmra.mxu1 %vm316_vm0, %v5230_v47 }
 0x2a7   : > { %4995 = vmatpush3.msra.mxu0 %v6631_v33  ;;  %5002 = vmatpush3.msra.mxu1 %v3895_v14  ;;  %v5250_v33 = vunpack.i.l.bf16 %v6756_v2 }
 0x2a8   : > { %4996 = vmatprep.subr.mxu0 %v3892_v16  ;;  %4998 = vmatprep.mubr.msk.f32.mxu0 %vm316_vm0, %v5236_v36 }
 0x2a9   : > { %5003 = vmatprep.subr.mxu1 %v3894_v10  ;;  %5005 = vmatprep.mubr.msk.f32.mxu1 %vm316_vm0, %v5239_v25 }
 0x2aa   : > { %4997 = vmatpush3.msra.mxu0 %v3892_v16  ;;  %5004 = vmatpush3.msra.mxu1 %v3894_v10 }
 0x2ab   : > { %5008 = vmatprep.subr.mxu0 %v7146_v49  ;;  %5015 = vmatprep.subr.mxu1 %v3899_v44 }
 0x2ac   : > { %4999 = vmatmul.mubr.msk.f32.vlgmr.msra.gmra.mxu0 %vm316_vm0, %v5241_v39  ;;  %5006 = vmatmul.mubr.msk.f32.vlgmr.msra.gmra.mxu1 %vm316_vm0, %v5244_v42 }
 0x2ad   : > { %5009 = vmatpush3.msra.mxu0 %v7146_v49  ;;  %5016 = vmatpush3.msra.mxu1 %v3899_v44 }
 0x2ae   : > { %5010 = vmatprep.subr.mxu0 %v3896_v59  ;;  %5017 = vmatprep.subr.mxu1 %v7148_v55 }
 0x2af   : > { %5011 = vmatpush3.msra.mxu0 %v3896_v59  ;;  %5012 = vmatprep.mubr.msk.f32.mxu0 %vm316_vm0, %v5250_v33 }
 0x2b0   : > { %5018 = vmatpush3.msra.mxu1 %v7148_v55  ;;  %5019 = vmatprep.mubr.msk.f32.mxu1 %vm316_vm0, %v5253_v48 }
 0x2b1   : > { %5013 = vmatmul.mubr.msk.f32.vlgmr.msra.gmra.mxu0 %vm316_vm0, %v5255_v45  ;;  %5020 = vmatmul.mubr.msk.f32.vlgmr.msra.gmra.mxu1 %vm316_vm0, %v5258_v58  ;;  %vm4424_vm0 = vcmask 261120  }
 0x2b2   : > { %5259 = vset.pattern.permute.xlu1 %v5399_v28  ;;  %5260 = vset.pattern.permute.xlu0 %v5399_v28 }
 0x348   : > { %v4916_v62 = vpop.f32.mrf.mxu0  ;;  %v4923_v29 = vpop.f32.mrf.mxu1 }
 0x34a   : > { %v2256_v34 = vpop.f32.mrf.mxu0  ;;  %v2369_v22 = vpop.f32.mrf.mxu1 }
 0x34e   : > { %v4930_v35 = vpop.f32.mrf.mxu0  ;;  %v4937_v8 = vpop.f32.mrf.mxu1 }
 0x350   : > { %v2482_v18 = vpop.f32.mrf.mxu0  ;;  %v2595_v57 = vpop.f32.mrf.mxu1 }
 0x354   : > { %v4944_v3 = vpop.f32.mrf.mxu0  ;;  %v4951_v26 = vpop.f32.mrf.mxu1 }
 0x355   : > { %v2714_v12 = vadd.f32 %v4944_v3, %v4916_v62  ;;  %v2827_v11 = vadd.f32 %v4951_v26, %v4923_v29 }
 0x356   : > { %v2708_v43 = vpop.f32.mrf.mxu0  ;;  %v2821_v24 = vpop.f32.mrf.mxu1 }
 0x357   : > { %v2709_v50 = vadd.f32 %v2708_v43, %v2256_v34  ;;  %v2822_v7 = vadd.f32 %v2821_v24, %v2369_v22 }
 0x35a   : > { %v4958_v37 = vpop.f32.mrf.mxu0  ;;  %v4965_v40 = vpop.f32.mrf.mxu1 }
 0x35b   : > { %v2940_v61 = vadd.f32 %v4958_v37, %v4930_v35  ;;  %v3053_v16 = vadd.f32 %v4965_v40, %v4937_v8 }
 0x35c   : > { %v2934_v63 = vpop.f32.mrf.mxu0  ;;  %v3047_v56 = vpop.f32.mrf.mxu1 }
 0x35d   : > { %v2935_v15 = vadd.f32 %v2934_v63, %v2482_v18  ;;  %v3048_v23 = vadd.f32 %v3047_v56, %v2595_v57 }
 0x360   : > { %v4972_v1 = vpop.f32.mrf.mxu0  ;;  %v4979_v19 = vpop.f32.mrf.mxu1 }
 0x361   : > { %v3701_v51 = vadd.f32 %v4972_v1, %v2714_v12  ;;  %v3703_v4 = vadd.f32 %v4979_v19, %v2827_v11 }
 0x362   : > { %v3352_v5 = vpop.f32.mrf.mxu0  ;;  %v3465_v32 = vpop.f32.mrf.mxu1 }
 0x363   : > { %v3700_v30 = vadd.f32 %v3352_v5, %v2709_v50  ;;  %v3702_v60 = vadd.f32 %v3465_v32, %v2822_v7 }
 0x366   : > { %v4986_v41 = vpop.f32.mrf.mxu0  ;;  %v4993_v17 = vpop.f32.mrf.mxu1 }
 0x367   : > { %v3705_v25 = vadd.f32 %v4986_v41, %v2940_v61  ;;  %v3707_v49 = vadd.f32 %v4993_v17, %v3053_v16 }
 0x368   : > { %v3578_v0 = vpop.f32.mrf.mxu0  ;;  %v3691_v2 = vpop.f32.mrf.mxu1 }
 0x369   : > { %v3704_v31 = vadd.f32 %v3578_v0, %v2935_v15  ;;  %v3706_v46 = vadd.f32 %v3691_v2, %v3048_v23 }
 0x36c   : > { %v5000_v13 = vpop.f32.mrf.mxu0  ;;  %v5007_v9 = vpop.f32.mrf.mxu1 }
 0x36d   : > { %v4353_v27 = vadd.f32 %v5000_v13, %v3701_v51  ;;  %v4355_v53 = vadd.f32 %v5007_v9, %v3703_v4 }
 0x36e   : > { %v4004_v14 = vpop.f32.mrf.mxu0  ;;  %v4117_v38 = vpop.f32.mrf.mxu1 }
 0x36f   : > { %v4361_v6 = vadd.f32 1e-14, %v4353_v27  ;;  %v4363_v47 = vadd.f32 1e-14, %v4355_v53  ;;  %v4352_v21 = vadd.f32 %v4004_v14, %v3700_v30  ;;  %v4354_v36 = vadd.f32 %v4117_v38, %v3702_v60 }
 0x371   : > { %5261 = vrcp.f32 %v4361_v6  ;;  %v4362_v10 = vadd.f32 1e-14, %v4354_v36  ;;  %v5014_v20 = vpop.f32.mrf.mxu0  ;;  %v5021_v54 = vpop.f32.mrf.mxu1  ;;  %v4360_v42 = vadd.f32 1e-14, %v4352_v21 }
 0x372   : > { %5263 = vrcp.f32 %v4363_v47  ;;  %v4357_v39 = vadd.f32 %v5014_v20, %v3705_v25  ;;  %v4359_v58 = vadd.f32 %v5021_v54, %v3707_v49 }
 0x373   : > { %v4230_v44 = vpop.f32.mrf.mxu0  ;;  %v4343_v33 = vpop.f32.mrf.mxu1  ;;  %5265 = vrcp.f32 %v4362_v10 }
 0x374   : > { %v4356_v52 = vadd.f32 %v4230_v44, %v3704_v31  ;;  %v4358_v59 = vadd.f32 %v4343_v33, %v3706_v46  ;;  %5267 = vrcp.f32 %v4360_v42  ;;  %v4365_v48 = vadd.f32 1e-14, %v4357_v39 }
 0x375   : > { %v4367_v28 = vadd.f32 1e-14, %v4359_v58 }
 0x376   : > { %v4364_v45 = vadd.f32 1e-14, %v4356_v52  ;;  %v4366_v55 = vadd.f32 1e-14, %v4358_v59 }
 0x378   : > { %5269 = vrcp.f32 %v4364_v45 }
 0x379   : > { %5271 = vrcp.f32 %v4365_v48 }
 0x37a   : > { %5273 = vrcp.f32 %v4366_v55 }
 0x37b   : > { %5275 = vrcp.f32 %v4367_v28 }
 0x37e   : > { %v5262_v62 = vpop.eup %5261 }
 0x37f   : > { %v5264_v29 = vpop.eup %5263  ;;  %4383 = vperm.xlu1 %5259, %v5262_v62  }
 0x380   : > { %4393 = vperm.xlu0 %5260, %v5264_v29   ;;  %v5266_v34 = vpop.eup %5265 }
 0x381   : > { %v5268_v22 = vpop.eup %5267 }
 0x383   : > { %4388 = vperm.xlu1 %5259, %v5266_v34  }
 0x384   : > { %4378 = vperm.xlu0 %5260, %v5268_v22  }
 0x385   : > { %v5270_v35 = vpop.eup %5269 }
 0x386   : > { %v5272_v8 = vpop.eup %5271 }
 0x387   : > { %4398 = vperm.xlu1 %5259, %v5270_v35   ;;  %v5274_v18 = vpop.eup %5273 }
 0x388   : > { %4403 = vperm.xlu0 %5260, %v5272_v8   ;;  %v5276_v57 = vpop.eup %5275 }
 0x38b   : > { %4408 = vperm.xlu1 %5259, %v5274_v18  }
 0x38c   : > { %4413 = vperm.xlu0 %5260, %v5276_v57  }
 0x3fa   : > { %v4384_v3 = vpop.permute.xlu1 %4383 }
 0x3fb   : > { %v4394_v26 = vpop.permute.xlu0 %4393  ;;  %v4417_v43 = vmul.f32 %v4384_v3, %v4353_v27 }
 0x3fc   : > { %v4419_v24 = vmul.f32 %v4394_v26, %v4355_v53 }
 0x3fd   : > { %4426 = vst.msk [vmem:[%s225_s22 + $0x8] sm:$0xff] %vm4424_vm0, %v4417_v43 }
 0x3fe   : > { %4428 = vst.msk [vmem:[%s225_s22 + $0x18] sm:$0xff] %vm4424_vm0, %v4419_v24  ;;  %v4389_v37 = vpop.permute.xlu1 %4388 }
 0x3ff   : > { %v4418_v40 = vmul.f32 %v4389_v37, %v4354_v36  ;;  %v4379_v63 = vpop.permute.xlu0 %4378 }
 0x400   : > { %v4416_v56 = vmul.f32 %v4379_v63, %v4352_v21 }
 0x401   : > { %4427 = vst.msk [vmem:[%s225_s22 + $0x10] sm:$0xff] %vm4424_vm0, %v4418_v40 }
 0x402   : > { %4425 = vst.msk [vmem:[%s225_s22] sm:$0xff] %vm4424_vm0, %v4416_v56  ;;  %v4399_v1 = vpop.permute.xlu1 %4398 }
 0x403   : > { %v4420_v19 = vmul.f32 %v4399_v1, %v4356_v52  ;;  %v4404_v5 = vpop.permute.xlu0 %4403 }
 0x404   : > { %v4421_v32 = vmul.f32 %v4404_v5, %v4357_v39 }
 0x405   : > { %4429 = vst.msk [vmem:[%s225_s22 + $0x20] sm:$0xff] %vm4424_vm0, %v4420_v19 }
 0x406   : > { %4430 = vst.msk [vmem:[%s225_s22 + $0x28] sm:$0xff] %vm4424_vm0, %v4421_v32  ;;  %v4409_v41 = vpop.permute.xlu1 %4408 }
 0x407   : > { %v4422_v17 = vmul.f32 %v4409_v41, %v4358_v59  ;;  %v4414_v0 = vpop.permute.xlu0 %4413 }
 0x408   : > { %v4423_v2 = vmul.f32 %v4414_v0, %v4359_v58 }
 0x409   : > { %4431 = vst.msk [vmem:[%s225_s22 + $0x30] sm:$0xff] %vm4424_vm0, %v4422_v17 }
 0x40a   : > { %4432 = vst.msk [vmem:[%s225_s22 + $0x38] sm:$0xff] %vm4424_vm0, %v4423_v2 }
 0x40b   : > { %5326 = shalt.err (!%p5323_p0)
}
 0x40c   : > { %s5327_s6 = scalar_lea.hbm %s6837_s30, 1024  ;;  %s5331_s17 = scalar_lea.hbm %s6887_s3, 2048 }
 0x40d   : > { %p5328_p2 = scmp.ne.s32.totalorder %s6837_s30, %s5327_s6  ;;  %p5332_p3 = scmp.lt.s32.totalorder %s6837_s30, %s6887_s3 }
 0x40e   : > { %p5333_p6 = scmp.lt.s32.totalorder %s5331_s17, %s5327_s6 }
 0x40f   : > { %p5329_p9 = pnand %p5328_p2, %p7149_p13 }
 0x410   : > { %p5334_p11 = por %p5333_p6, %p5332_p3 }
 0x411   : > { %p5330_p1 = pneg %p5329_p9 }
 0x413   : > { %p5335_p12 = pnand %p5334_p11, %p5330_p1 }
 0x415   : > { %5338 = shalt.err (!%p5335_p12)
}
 0x416   : > { %s5401_s20 = smov 128   ;;  %s5402_s22 = smov 8  }
 0x417   : > { %5024 = dma.vmem_to_hbm [thread:$0]  (%p7149_p13), %s6839_s27, 1024, %s6837_s30, %s4434_s16, %s5401_s20, %s5401_s20, %s5402_s22  }
 0x418 PF: > { %s4463_s26 = sand.u32 1, %s5365_s12   ;;  %p7150_p4 = scmp.ne.s32.totalorder %s6937_s25, 0 }
 0x419   : > { %p7151_p5 = scmp.ge.s32.totalorder %s5377_s15, 2  ;;  %s4464_s28 = scalar_lea.sflag [#allocation4], %s4463_s26 }
 0x41b   : > { %p5031_p7 = pnand %p7151_p5, %p7150_p4 }
 0x41d   : > { %p5032_p8 = pneg %p5031_p7 }
 0x41f   : > { %5360 = dma.done.wait (%p5032_p8), %s4464_s28, 1024  }
 0x420   : > { %5362 = vsyncadd (%p5032_p8), %s4464_s28, 4294966272  ;;  %p16_p10 = scmp.ge.s32.totalorder %s5448_s18, 4   ;;  %s7152_s12 = smov %s5369_s13 }
 0x421   : > { %s7153_s13 = smov %s5373_s14  ;;  %s7154_s14 = smov %s5460_s21 }
 0x422   : > { %s7155_s15 = smov %s5448_s18  ;;  %18 = sbr.rel (!%p16_p10) target bundleno = 5 (0x5), region = 83 }
 0x427   :  { %4469 = vsyncpa [#allocation3], 1 }
 0x428   :  { %4471 = vsyncpa [#allocation3 + $0x1], 1 }
 0x429   :  { %4472 = vsyncpa [#allocation4], 1 }
 0x42a   :  { %4474 = vsyncpa [#allocation4 + $0x1], 1 }

</bundles_post_ra>
